<compile_context>
chip_gen: v5e
topology: v5e:2x2
jax: 0.10.0
libtpu: 0.0.40
codegen_flags: <defaults>
</compile_context>

<pallas_src>
import math

import jax
import jax.numpy as jnp
from jax.experimental import pallas as pl
from jax.experimental.pallas import tpu as pltpu


# ------------------------------ Model layout ------------------------------- #

# (din, dout) per Linear, in forward order (5 encoder + 5 decoder layers).
LAYER_DIMS = [
    (28 * 28, 128), (128, 64), (64, 36), (36, 18), (18, 9),       # encoder
    (9, 18), (18, 36), (36, 64), (64, 128), (128, 28 * 28),       # decoder
]
# Activation after each Linear.
ACTS = ["relu"] * 4 + ["none"] + ["relu"] * 4 + ["sigmoid"]

IN_FEATURES = 28 * 28        # 784
LANE = 128


def _pad_to(n, m):
    return ((n + m - 1) // m) * m


IN_PAD = _pad_to(IN_FEATURES, LANE)        # 896
ENC_PAD = _pad_to(9, LANE)                 # 128
DEC_PAD = IN_PAD                           # 896


# ----------------------------- Fused Pallas kernel ------------------------- #

def _ae_fused_kernel(x_ref, w_first_ref, w_mid_ref, w_last_ref, b_all_ref,
                     enc_ref, dec_ref):
    """One batch tile through all 10 Linear(+act) layers, fully in VMEM.

    x_ref:      (TB, 896)    bf16
    w_first:    (896, 128)   bf16   -- layer 0 weight
    w_mid:      (8, 128,128) bf16   -- layers 1..8 weights (zero-padded)
    w_last:     (128, 896)   bf16   -- layer 9 weight
    b_all:      (10, 896)    f32    -- all biases, zero-padded per row
    enc_ref:    (TB, 128)    f32    -- latent code (lanes 9.. are exact zeros)
    dec_ref:    (TB, 896)    bf16   -- reconstruction (lanes 784.. are padding)
    """
    h = x_ref[...]                                               # (TB, 896) bf16

    # Layer 0: 784(->896) -> 128, ReLU.   bf16 x bf16 -> f32 on the MXU.
    y = jnp.dot(h, w_first_ref[...], preferred_element_type=jnp.float32)
    y = y + b_all_ref[0:1, :LANE]
    h = jnp.maximum(y, 0.0).astype(jnp.bfloat16)

    # Layers 1..8: all padded to 128x128 tiles.
    for j in range(8):
        i = j + 1
        y = jnp.dot(h, w_mid_ref[j], preferred_element_type=jnp.float32)
        y = y + b_all_ref[i:i + 1, :LANE]
        if ACTS[i] == "relu":
            h = jnp.maximum(y, 0.0).astype(jnp.bfloat16)
        else:                                   # "none" -> encoder output (latent)
            enc_ref[...] = y
            h = y.astype(jnp.bfloat16)

    # Layer 9: 128 -> 784(->896), sigmoid.  exp + approx reciprocal stay on the EUP.
    y = jnp.dot(h, w_last_ref[...], preferred_element_type=jnp.float32)
    y = y + b_all_ref[9:10, :]
    dec_ref[...] = pl.reciprocal(1.0 + jnp.exp(-y),
                                 approx=True).astype(dec_ref.dtype)


# ------------------------------- Parameters -------------------------------- #

def init_params(key):
    """PyTorch-style U(-1/sqrt(din), 1/sqrt(din)) init.

    Weights are stored bf16 and zero-padded to 128-lane multiples; biases are
    packed into a single (10, 896) f32 slab.  The zero padding is a correctness
    invariant (keeps padded activation lanes exactly 0 through every layer).
    """
    w_pads, b_rows = [], []
    for din, dout in LAYER_DIMS:
        key, kw, kb = jax.random.split(key, 3)
        bound = 1.0 / math.sqrt(din)
        w = jax.random.uniform(kw, (din, dout), jnp.float32, -bound, bound)
        b = jax.random.uniform(kb, (dout,), jnp.float32, -bound, bound)
        dpi, dpo = _pad_to(din, LANE), _pad_to(dout, LANE)
        w_pad = jnp.zeros((dpi, dpo), jnp.bfloat16).at[:din, :dout].set(
            w.astype(jnp.bfloat16))
        b_row = jnp.zeros((IN_PAD,), jnp.float32).at[:dout].set(b)
        w_pads.append(w_pad)
        b_rows.append(b_row)

    return {
        "w_first": w_pads[0],                 # (896, 128)  bf16
        "w_mid": jnp.stack(w_pads[1:9]),      # (8, 128, 128) bf16
        "w_last": w_pads[9],                  # (128, 896)  bf16
        "b_all": jnp.stack(b_rows),           # (10, 896)   f32
    }


# ------------------------------ Forward wrapper ----------------------------- #

def ae_forward(params, x):
    """Forward matching AE.forward: returns (encoded (B,9), decoded (B,784))."""
    B, din = x.shape
    assert din == IN_FEATURES

    # Batch tile: multiple of 16 (bf16 sublane packing), floor 16, cap 512
    # (keeps the double-buffered working set a few MB -> safe on v7x's 64 MiB).
    TB = min(512, _pad_to(max(B, 1), 16))
    n_tiles = pl.cdiv(B, TB)
    B_pad = n_tiles * TB

    # bf16 input: the kernel truncates to bf16 before every matmul anyway, so
    # this only removes HBM bytes / VMEM footprint, not precision.
    x_pad = jnp.zeros((B_pad, IN_PAD), jnp.bfloat16).at[:B, :IN_FEATURES].set(
        x.astype(jnp.bfloat16))

    enc_pad, dec_pad = pl.pallas_call(
        _ae_fused_kernel,
        out_shape=(
            jax.ShapeDtypeStruct((B_pad, ENC_PAD), jnp.float32),
            jax.ShapeDtypeStruct((B_pad, DEC_PAD), jnp.bfloat16),
        ),
        grid=(n_tiles,),
        in_specs=[
            pl.BlockSpec((TB, IN_PAD), lambda i: (i, 0)),
            pl.BlockSpec(params["w_first"].shape, lambda i: (0, 0)),
            pl.BlockSpec(params["w_mid"].shape, lambda i: (0, 0, 0)),
            pl.BlockSpec(params["w_last"].shape, lambda i: (0, 0)),
            pl.BlockSpec(params["b_all"].shape, lambda i: (0, 0)),
        ],
        out_specs=(
            pl.BlockSpec((TB, ENC_PAD), lambda i: (i, 0)),
            pl.BlockSpec((TB, DEC_PAD), lambda i: (i, 0)),
        ),
        compiler_params=pltpu.CompilerParams(
            dimension_semantics=("parallel",),
        ),
    )(x_pad, params["w_first"], params["w_mid"], params["w_last"],
      params["b_all"])

    # NOTE: at large B, prefer returning the lane-padded slabs (or fusing this
    # slice into the consumer) to avoid an extra HBM round-trip; sliced here to
    # honor AE.forward's (B, 9) / (B, 784) contract.
    return enc_pad[:B, :9], dec_pad[:B, :IN_FEATURES]


# --------------------------- Pure-JAX reference ----------------------------- #

def ae_forward_ref(params, x):
    """Mirrors the kernel math (bf16 matmul operands, f32 accumulation)."""
    ws = ([params["w_first"]]
          + [params["w_mid"][j] for j in range(8)]
          + [params["w_last"]])
    h = x
    encoded = None
    for i, ((din, dout), act) in enumerate(zip(LAYER_DIMS, ACTS)):
        w = ws[i][:din, :dout].astype(jnp.float32)
        b = params["b_all"][i, :dout]
        y = jnp.dot(h.astype(jnp.bfloat16).astype(jnp.float32), w) + b
        if act == "relu":
            h = jnp.maximum(y, 0.0)
        elif act == "none":
            encoded = y
            h = y
        else:
            h = jax.nn.sigmoid(y)
    return encoded, h


if __name__ == "__main__":
    key = jax.random.PRNGKey(0)
    kp, kx = jax.random.split(key)
    params = init_params(kp)

    B = 2
    x = jax.random.uniform(kx, (B, IN_FEATURES), jnp.float32)  # MNIST-like in [0,1)

    encoded, decoded = jax.jit(ae_forward)(params, x)
    jax.block_until_ready((encoded, decoded))

    enc_ref, dec_ref = ae_forward_ref(params, x)
    assert encoded.shape == (B, 9) and decoded.shape == (B, IN_FEATURES)
    assert jnp.allclose(encoded, enc_ref, atol=2e-2, rtol=2e-2)
    assert jnp.allclose(decoded.astype(jnp.float32), dec_ref, atol=1e-2, rtol=1e-2)

    print("KERNEL_OK")
</pallas_src>

<mosaic_0001>
module attributes {stable_mosaic.version = 11 : i64} {
  func.func @_ae_fused_kernel(%arg0: i32, %arg1: memref<16x896xbf16, #tpu.memory_space<vmem>>, %arg2: memref<896x128xbf16, #tpu.memory_space<vmem>>, %arg3: memref<8x128x128xbf16, #tpu.memory_space<vmem>>, %arg4: memref<128x896xbf16, #tpu.memory_space<vmem>>, %arg5: memref<10x896xf32, #tpu.memory_space<vmem>>, %arg6: memref<16x128xf32, #tpu.memory_space<vmem>>, %arg7: memref<16x896xbf16, #tpu.memory_space<vmem>>) attributes {dimension_semantics = [#tpu.dimension_semantics<parallel>], iteration_bounds = array<i64: 1>, scalar_prefetch = 0 : i64, scratch_operands = 0 : i64, tpu.core_type = #tpu.core_type<tc>, window_params = [{transform_indices = @transform_0, window_bounds = array<i64: 16, 896>}, {pipeline_mode = #tpu.pipeline_mode<synchronous>, transform_indices = @transform_1, window_bounds = array<i64: 896, 128>}, {pipeline_mode = #tpu.pipeline_mode<synchronous>, transform_indices = @transform_2, window_bounds = array<i64: 8, 128, 128>}, {pipeline_mode = #tpu.pipeline_mode<synchronous>, transform_indices = @transform_3, window_bounds = array<i64: 128, 896>}, {pipeline_mode = #tpu.pipeline_mode<synchronous>, transform_indices = @transform_4, window_bounds = array<i64: 10, 896>}, {transform_indices = @transform_5, window_bounds = array<i64: 16, 128>}, {transform_indices = @transform_6, window_bounds = array<i64: 16, 896>}]} {
    %c0 = arith.constant 0 : index
    %c0_0 = arith.constant 0 : index
    %0 = vector.load %arg1[%c0, %c0_0] : memref<16x896xbf16, #tpu.memory_space<vmem>>, vector<16x896xbf16>
    %c0_1 = arith.constant 0 : index
    %c0_2 = arith.constant 0 : index
    %1 = vector.load %arg2[%c0_1, %c0_2] : memref<896x128xbf16, #tpu.memory_space<vmem>>, vector<896x128xbf16>
    %cst = arith.constant dense<0.000000e+00> : vector<16x128xf32>
    %2 = tpu.matmul %0, %1, %cst {dimension_numbers = #tpu.dot_dimension_numbers<[1], [0], [0], [1], [0, 0, 1, 1], [], []>} : vector<16x896xbf16>, vector<896x128xbf16>, vector<16x128xf32> -> vector<16x128xf32>
    %c0_3 = arith.constant 0 : index
    %c0_4 = arith.constant 0 : index
    %3 = vector.load %arg5[%c0_3, %c0_4] : memref<10x896xf32, #tpu.memory_space<vmem>>, vector<1x128xf32>
    %4 = vector.broadcast %3 : vector<1x128xf32> to vector<16x128xf32>
    %5 = arith.addf %2, %4 : vector<16x128xf32>
    %cst_5 = arith.constant 0.000000e+00 : f32
    %6 = vector.broadcast %cst_5 : f32 to vector<16x128xf32>
    %7 = arith.maximumf %5, %6 : vector<16x128xf32>
    %8 = arith.truncf %7 : vector<16x128xf32> to vector<16x128xbf16>
    %c0_6 = arith.constant 0 : index
    %c0_7 = arith.constant 0 : index
    %c0_8 = arith.constant 0 : index
    %9 = vector.load %arg3[%c0_6, %c0_7, %c0_8] : memref<8x128x128xbf16, #tpu.memory_space<vmem>>, vector<1x128x128xbf16>
    %10 = vector.shape_cast %9 : vector<1x128x128xbf16> to vector<128x128xbf16>
    %cst_9 = arith.constant dense<0.000000e+00> : vector<16x128xf32>
    %11 = tpu.matmul %8, %10, %cst_9 {dimension_numbers = #tpu.dot_dimension_numbers<[1], [0], [0], [1], [0, 0, 1, 1], [], []>} : vector<16x128xbf16>, vector<128x128xbf16>, vector<16x128xf32> -> vector<16x128xf32>
    %c1 = arith.constant 1 : index
    %c0_10 = arith.constant 0 : index
    %12 = vector.load %arg5[%c1, %c0_10] : memref<10x896xf32, #tpu.memory_space<vmem>>, vector<1x128xf32>
    %13 = vector.broadcast %12 : vector<1x128xf32> to vector<16x128xf32>
    %14 = arith.addf %11, %13 : vector<16x128xf32>
    %cst_11 = arith.constant 0.000000e+00 : f32
    %15 = vector.broadcast %cst_11 : f32 to vector<16x128xf32>
    %16 = arith.maximumf %14, %15 : vector<16x128xf32>
    %17 = arith.truncf %16 : vector<16x128xf32> to vector<16x128xbf16>
    %c1_12 = arith.constant 1 : index
    %c0_13 = arith.constant 0 : index
    %c0_14 = arith.constant 0 : index
    %18 = vector.load %arg3[%c1_12, %c0_13, %c0_14] : memref<8x128x128xbf16, #tpu.memory_space<vmem>>, vector<1x128x128xbf16>
    %19 = vector.shape_cast %18 : vector<1x128x128xbf16> to vector<128x128xbf16>
    %cst_15 = arith.constant dense<0.000000e+00> : vector<16x128xf32>
    %20 = tpu.matmul %17, %19, %cst_15 {dimension_numbers = #tpu.dot_dimension_numbers<[1], [0], [0], [1], [0, 0, 1, 1], [], []>} : vector<16x128xbf16>, vector<128x128xbf16>, vector<16x128xf32> -> vector<16x128xf32>
    %c2 = arith.constant 2 : index
    %c0_16 = arith.constant 0 : index
    %21 = vector.load %arg5[%c2, %c0_16] : memref<10x896xf32, #tpu.memory_space<vmem>>, vector<1x128xf32>
    %22 = vector.broadcast %21 : vector<1x128xf32> to vector<16x128xf32>
    %23 = arith.addf %20, %22 : vector<16x128xf32>
    %cst_17 = arith.constant 0.000000e+00 : f32
    %24 = vector.broadcast %cst_17 : f32 to vector<16x128xf32>
    %25 = arith.maximumf %23, %24 : vector<16x128xf32>
    %26 = arith.truncf %25 : vector<16x128xf32> to vector<16x128xbf16>
    %c2_18 = arith.constant 2 : index
    %c0_19 = arith.constant 0 : index
    %c0_20 = arith.constant 0 : index
    %27 = vector.load %arg3[%c2_18, %c0_19, %c0_20] : memref<8x128x128xbf16, #tpu.memory_space<vmem>>, vector<1x128x128xbf16>
    %28 = vector.shape_cast %27 : vector<1x128x128xbf16> to vector<128x128xbf16>
    %cst_21 = arith.constant dense<0.000000e+00> : vector<16x128xf32>
    %29 = tpu.matmul %26, %28, %cst_21 {dimension_numbers = #tpu.dot_dimension_numbers<[1], [0], [0], [1], [0, 0, 1, 1], [], []>} : vector<16x128xbf16>, vector<128x128xbf16>, vector<16x128xf32> -> vector<16x128xf32>
    %c3 = arith.constant 3 : index
    %c0_22 = arith.constant 0 : index
    %30 = vector.load %arg5[%c3, %c0_22] : memref<10x896xf32, #tpu.memory_space<vmem>>, vector<1x128xf32>
    %31 = vector.broadcast %30 : vector<1x128xf32> to vector<16x128xf32>
    %32 = arith.addf %29, %31 : vector<16x128xf32>
    %cst_23 = arith.constant 0.000000e+00 : f32
    %33 = vector.broadcast %cst_23 : f32 to vector<16x128xf32>
    %34 = arith.maximumf %32, %33 : vector<16x128xf32>
    %35 = arith.truncf %34 : vector<16x128xf32> to vector<16x128xbf16>
    %c3_24 = arith.constant 3 : index
    %c0_25 = arith.constant 0 : index
    %c0_26 = arith.constant 0 : index
    %36 = vector.load %arg3[%c3_24, %c0_25, %c0_26] : memref<8x128x128xbf16, #tpu.memory_space<vmem>>, vector<1x128x128xbf16>
    %37 = vector.shape_cast %36 : vector<1x128x128xbf16> to vector<128x128xbf16>
    %cst_27 = arith.constant dense<0.000000e+00> : vector<16x128xf32>
    %38 = tpu.matmul %35, %37, %cst_27 {dimension_numbers = #tpu.dot_dimension_numbers<[1], [0], [0], [1], [0, 0, 1, 1], [], []>} : vector<16x128xbf16>, vector<128x128xbf16>, vector<16x128xf32> -> vector<16x128xf32>
    %c4 = arith.constant 4 : index
    %c0_28 = arith.constant 0 : index
    %39 = vector.load %arg5[%c4, %c0_28] : memref<10x896xf32, #tpu.memory_space<vmem>>, vector<1x128xf32>
    %40 = vector.broadcast %39 : vector<1x128xf32> to vector<16x128xf32>
    %41 = arith.addf %38, %40 : vector<16x128xf32>
    %c0_29 = arith.constant 0 : index
    %c0_30 = arith.constant 0 : index
    %42 = vector.load %arg6[%c0_29, %c0_30] : memref<16x128xf32, #tpu.memory_space<vmem>>, vector<16x128xf32>
    tpu.vector_store %arg6[%c0_29, %c0_30], %41 {strides = array<i32>} : memref<16x128xf32, #tpu.memory_space<vmem>>, vector<16x128xf32>,
    %43 = arith.truncf %41 : vector<16x128xf32> to vector<16x128xbf16>
    %c4_31 = arith.constant 4 : index
    %c0_32 = arith.constant 0 : index
    %c0_33 = arith.constant 0 : index
    %44 = vector.load %arg3[%c4_31, %c0_32, %c0_33] : memref<8x128x128xbf16, #tpu.memory_space<vmem>>, vector<1x128x128xbf16>
    %45 = vector.shape_cast %44 : vector<1x128x128xbf16> to vector<128x128xbf16>
    %cst_34 = arith.constant dense<0.000000e+00> : vector<16x128xf32>
    %46 = tpu.matmul %43, %45, %cst_34 {dimension_numbers = #tpu.dot_dimension_numbers<[1], [0], [0], [1], [0, 0, 1, 1], [], []>} : vector<16x128xbf16>, vector<128x128xbf16>, vector<16x128xf32> -> vector<16x128xf32>
    %c5 = arith.constant 5 : index
    %c0_35 = arith.constant 0 : index
    %47 = vector.load %arg5[%c5, %c0_35] : memref<10x896xf32, #tpu.memory_space<vmem>>, vector<1x128xf32>
    %48 = vector.broadcast %47 : vector<1x128xf32> to vector<16x128xf32>
    %49 = arith.addf %46, %48 : vector<16x128xf32>
    %cst_36 = arith.constant 0.000000e+00 : f32
    %50 = vector.broadcast %cst_36 : f32 to vector<16x128xf32>
    %51 = arith.maximumf %49, %50 : vector<16x128xf32>
    %52 = arith.truncf %51 : vector<16x128xf32> to vector<16x128xbf16>
    %c5_37 = arith.constant 5 : index
    %c0_38 = arith.constant 0 : index
    %c0_39 = arith.constant 0 : index
    %53 = vector.load %arg3[%c5_37, %c0_38, %c0_39] : memref<8x128x128xbf16, #tpu.memory_space<vmem>>, vector<1x128x128xbf16>
    %54 = vector.shape_cast %53 : vector<1x128x128xbf16> to vector<128x128xbf16>
    %cst_40 = arith.constant dense<0.000000e+00> : vector<16x128xf32>
    %55 = tpu.matmul %52, %54, %cst_40 {dimension_numbers = #tpu.dot_dimension_numbers<[1], [0], [0], [1], [0, 0, 1, 1], [], []>} : vector<16x128xbf16>, vector<128x128xbf16>, vector<16x128xf32> -> vector<16x128xf32>
    %c6 = arith.constant 6 : index
    %c0_41 = arith.constant 0 : index
    %56 = vector.load %arg5[%c6, %c0_41] : memref<10x896xf32, #tpu.memory_space<vmem>>, vector<1x128xf32>
    %57 = vector.broadcast %56 : vector<1x128xf32> to vector<16x128xf32>
    %58 = arith.addf %55, %57 : vector<16x128xf32>
    %cst_42 = arith.constant 0.000000e+00 : f32
    %59 = vector.broadcast %cst_42 : f32 to vector<16x128xf32>
    %60 = arith.maximumf %58, %59 : vector<16x128xf32>
    %61 = arith.truncf %60 : vector<16x128xf32> to vector<16x128xbf16>
    %c6_43 = arith.constant 6 : index
    %c0_44 = arith.constant 0 : index
    %c0_45 = arith.constant 0 : index
    %62 = vector.load %arg3[%c6_43, %c0_44, %c0_45] : memref<8x128x128xbf16, #tpu.memory_space<vmem>>, vector<1x128x128xbf16>
    %63 = vector.shape_cast %62 : vector<1x128x128xbf16> to vector<128x128xbf16>
    %cst_46 = arith.constant dense<0.000000e+00> : vector<16x128xf32>
    %64 = tpu.matmul %61, %63, %cst_46 {dimension_numbers = #tpu.dot_dimension_numbers<[1], [0], [0], [1], [0, 0, 1, 1], [], []>} : vector<16x128xbf16>, vector<128x128xbf16>, vector<16x128xf32> -> vector<16x128xf32>
    %c7 = arith.constant 7 : index
    %c0_47 = arith.constant 0 : index
    %65 = vector.load %arg5[%c7, %c0_47] : memref<10x896xf32, #tpu.memory_space<vmem>>, vector<1x128xf32>
    %66 = vector.broadcast %65 : vector<1x128xf32> to vector<16x128xf32>
    %67 = arith.addf %64, %66 : vector<16x128xf32>
    %cst_48 = arith.constant 0.000000e+00 : f32
    %68 = vector.broadcast %cst_48 : f32 to vector<16x128xf32>
    %69 = arith.maximumf %67, %68 : vector<16x128xf32>
    %70 = arith.truncf %69 : vector<16x128xf32> to vector<16x128xbf16>
    %c7_49 = arith.constant 7 : index
    %c0_50 = arith.constant 0 : index
    %c0_51 = arith.constant 0 : index
    %71 = vector.load %arg3[%c7_49, %c0_50, %c0_51] : memref<8x128x128xbf16, #tpu.memory_space<vmem>>, vector<1x128x128xbf16>
    %72 = vector.shape_cast %71 : vector<1x128x128xbf16> to vector<128x128xbf16>
    %cst_52 = arith.constant dense<0.000000e+00> : vector<16x128xf32>
    %73 = tpu.matmul %70, %72, %cst_52 {dimension_numbers = #tpu.dot_dimension_numbers<[1], [0], [0], [1], [0, 0, 1, 1], [], []>} : vector<16x128xbf16>, vector<128x128xbf16>, vector<16x128xf32> -> vector<16x128xf32>
    %c8 = arith.constant 8 : index
    %c0_53 = arith.constant 0 : index
    %74 = vector.load %arg5[%c8, %c0_53] : memref<10x896xf32, #tpu.memory_space<vmem>>, vector<1x128xf32>
    %75 = vector.broadcast %74 : vector<1x128xf32> to vector<16x128xf32>
    %76 = arith.addf %73, %75 : vector<16x128xf32>
    %cst_54 = arith.constant 0.000000e+00 : f32
    %77 = vector.broadcast %cst_54 : f32 to vector<16x128xf32>
    %78 = arith.maximumf %76, %77 : vector<16x128xf32>
    %79 = arith.truncf %78 : vector<16x128xf32> to vector<16x128xbf16>
    %c0_55 = arith.constant 0 : index
    %c0_56 = arith.constant 0 : index
    %80 = vector.load %arg4[%c0_55, %c0_56] : memref<128x896xbf16, #tpu.memory_space<vmem>>, vector<128x896xbf16>
    %cst_57 = arith.constant dense<0.000000e+00> : vector<16x896xf32>
    %81 = tpu.matmul %79, %80, %cst_57 {dimension_numbers = #tpu.dot_dimension_numbers<[1], [0], [0], [1], [0, 0, 1, 1], [], []>} : vector<16x128xbf16>, vector<128x896xbf16>, vector<16x896xf32> -> vector<16x896xf32>
    %c9 = arith.constant 9 : index
    %c0_58 = arith.constant 0 : index
    %82 = vector.load %arg5[%c9, %c0_58] : memref<10x896xf32, #tpu.memory_space<vmem>>, vector<1x896xf32>
    %83 = vector.broadcast %82 : vector<1x896xf32> to vector<16x896xf32>
    %84 = arith.addf %81, %83 : vector<16x896xf32>
    %cst_59 = arith.constant 0.000000e+00 : f32
    %85 = vector.broadcast %cst_59 : f32 to vector<16x896xf32>
    %86 = arith.subf %85, %84 : vector<16x896xf32>
    %87 = math.exp %86 : vector<16x896xf32>
    %cst_60 = arith.constant 1.000000e+00 : f32
    %88 = vector.broadcast %cst_60 : f32 to vector<16x896xf32>
    %89 = arith.addf %88, %87 : vector<16x896xf32>
    %90 = tpu.reciprocal %89 {approx = true} : vector<16x896xf32> -> vector<16x896xf32>
    %91 = arith.truncf %90 : vector<16x896xf32> to vector<16x896xbf16>
    %c0_61 = arith.constant 0 : index
    %c0_62 = arith.constant 0 : index
    %92 = vector.load %arg7[%c0_61, %c0_62] : memref<16x896xbf16, #tpu.memory_space<vmem>>, vector<16x896xbf16>
    tpu.vector_store %arg7[%c0_61, %c0_62], %91 {strides = array<i32>} : memref<16x896xbf16, #tpu.memory_space<vmem>>, vector<16x896xbf16>,
    return
  }
  func.func @transform_0(%arg0: i32) -> (i32, i32) {
    %c0_i32 = arith.constant 0 : i32
    %c0_i32_0 = arith.constant 0 : i32
    return %arg0, %c0_i32 : i32, i32
  }
  func.func @transform_1(%arg0: i32) -> (i32, i32) {
    %c0_i32 = arith.constant 0 : i32
    %c0_i32_0 = arith.constant 0 : i32
    %c0_i32_1 = arith.constant 0 : i32
    return %c0_i32, %c0_i32_0 : i32, i32
  }
  func.func @transform_2(%arg0: i32) -> (i32, i32, i32) {
    %c0_i32 = arith.constant 0 : i32
    %c0_i32_0 = arith.constant 0 : i32
    %c0_i32_1 = arith.constant 0 : i32
    %c0_i32_2 = arith.constant 0 : i32
    return %c0_i32, %c0_i32_0, %c0_i32_1 : i32, i32, i32
  }
  func.func @transform_3(%arg0: i32) -> (i32, i32) {
    %c0_i32 = arith.constant 0 : i32
    %c0_i32_0 = arith.constant 0 : i32
    %c0_i32_1 = arith.constant 0 : i32
    return %c0_i32, %c0_i32_0 : i32, i32
  }
  func.func @transform_4(%arg0: i32) -> (i32, i32) {
    %c0_i32 = arith.constant 0 : i32
    %c0_i32_0 = arith.constant 0 : i32
    %c0_i32_1 = arith.constant 0 : i32
    return %c0_i32, %c0_i32_0 : i32, i32
  }
  func.func @transform_5(%arg0: i32) -> (i32, i32) {
    %c0_i32 = arith.constant 0 : i32
    %c0_i32_0 = arith.constant 0 : i32
    return %arg0, %c0_i32 : i32, i32
  }
  func.func @transform_6(%arg0: i32) -> (i32, i32) {
    %c0_i32 = arith.constant 0 : i32
    %c0_i32_0 = arith.constant 0 : i32
    return %arg0, %c0_i32 : i32, i32
  }
}

</mosaic_0001>

<bundles_post_ra>
// kernel: ae_forward.1
= control target key start
LH: loop header
LB: loop body
LE: loop exit
PB: predicated region body
PF: predicated region fallthrough
CT: control target
= control target key end

     0   :  { %12 = vsyncpa [#allocation3], 0  ;;  %s3129_s0 = inlined_call_operand.vmem [shape: bf16[16,896], index: 0, kind: input, shape index: {}]   ;;  %s3130_s1 = inlined_call_operand.hbm [shape: bf16[896,128], index: 1, kind: input, shape index: {}]   ;;  %s3131_s2 = inlined_call_operand.hbm [shape: bf16[8,128,128], index: 2, kind: input, shape index: {}]   ;;  %s3132_s3 = inlined_call_operand.hbm [shape: bf16[128,896], index: 3, kind: input, shape index: {}]   ;;  %s3133_s4 = inlined_call_operand.hbm [shape: f32[10,896], index: 4, kind: input, shape index: {}]   ;;  %s3134_s5 = inlined_call_operand.vmem [shape: f32[16,128], index: 5, kind: output, shape index: {0}]   ;;  %s3135_s6 = inlined_call_operand.vmem [shape: bf16[16,896], index: 6, kind: output, shape index: {1}]  }
   0x1   :  { %13 = vsyncpa [#allocation5], 0 }
   0x2   :  { %14 = vsyncpa [#allocation8], 0  ;;  %s34_s23 = sshll.u32 %s3131_s2, 4  ;;  %s2991_s24 = smov [#allocation4]   ;;  %s35_s23 = int_to_ptr.hbm [resolvable:$true] %s34_s23 }
   0x3   :  { %s36_s25 = sshll.u32 %s2991_s24, 4  ;;  %s21_s28 = sshll.u32 %s3130_s1, 4  ;;  %s37_s25 = int_to_ptr.vmem [resolvable:$true] %s36_s25  ;;  %s22_s28 = int_to_ptr.hbm [resolvable:$true] %s21_s28 }
   0x4   :  { %s2992_s29 = smov 64   ;;  %s2993_s30 = smov 4  }
   0x5   :  { %42 = dma.hbm_to_vmem [thread:$0]  %s35_s23, 8192, %s37_s25, [#allocation5], %s2992_s29, %s2992_s29, %s2993_s30  }
   0x6   :  { %s2994_s7 = smov [#allocation2]   ;;  %s47_s11 = sshll.u32 %s3132_s3, 4  ;;  %s48_s11 = int_to_ptr.hbm [resolvable:$true] %s47_s11 }
   0x7   :  { %s23_s8 = sshll.u32 %s2994_s7, 4  ;;  %s2995_s2 = smov [#allocation6]   ;;  %s24_s8 = int_to_ptr.vmem [resolvable:$true] %s23_s8 }
   0x8   :  { %29 = dma.hbm_to_vmem [thread:$0]  %s22_s28, 7168, %s24_s8, [#allocation3], %s2992_s29, %s2992_s29, %s2993_s30  }
   0x9   :  { %s49_s12 = sshll.u32 %s2995_s2, 4  ;;  %s60_s1 = sshll.u32 %s3133_s4, 4  ;;  %s50_s12 = int_to_ptr.vmem [resolvable:$true] %s49_s12  ;;  %s61_s1 = int_to_ptr.hbm [resolvable:$true] %s60_s1 }
   0xa   :  { %s2996_s15 = smov 448   ;;  %s2997_s16 = smov 28  }
   0xb   :  { %55 = dma.hbm_to_vmem [thread:$0]  %s48_s11, 7168, %s50_s12, [#allocation5], %s2996_s15, %s2996_s15, %s2997_s16  }
   0xc   :  { %s2998_s17 = smov [#allocation7]   ;;  %s2999_s19 = smov 896  }
   0xd   :  { %s62_s18 = sshll.u32 %s2998_s17, 4  ;;  %s3000_s20 = smov 56   ;;  %s63_s18 = int_to_ptr.vmem [resolvable:$true] %s62_s18 }
   0xe   :  { %68 = dma.hbm_to_vmem [thread:$0]  %s61_s1, 1792, %s63_s18, [#allocation8], %s2999_s19, %s2999_s19, %s3000_s20  }
   0xf   :  { %2985 = dma.done.wait [#allocation3], 7168  }
  0x10   :  { %2986 = vsyncadd [#allocation3], 4294960128 }
  0x11   :  { %2987 = dma.done.wait [#allocation5], 15360  }
  0x12   :  { %2988 = vsyncadd [#allocation5], 4294951936 }
  0x13   :  { %2989 = dma.done.wait [#allocation8], 1792  }
  0x14   :  { %2990 = vsyncadd [#allocation8], 4294965504  ;;  %v2654_v0 = vld [vmem:[#allocation2 + $0x38] sm:$0xff]  ;;  %v2653_v3 = vld [vmem:[#allocation2 + $0x30] sm:$0xff] }
  0x15   :  { %v2662_v1 = vld [vmem:[#allocation2 + $0x78] sm:$0xff]  ;;  %578 = vmatpush.bf16.msra.mxu0 %v2654_v0  ;;  %v2661_v4 = vld [vmem:[#allocation2 + $0x70] sm:$0xff]  ;;  %v2652_v8 = vld [vmem:[#allocation2 + $0x28] sm:$0xff] }
  0x16   :  { %v2670_v2 = vld [vmem:[#allocation2 + $0xb8] sm:$0xff]  ;;  %592 = vmatpush.bf16.msra.mxu1 %v2662_v1  ;;  %v2669_v6 = vld [vmem:[#allocation2 + $0xb0] sm:$0xff]  ;;  %v2660_v9 = vld [vmem:[#allocation2 + $0x68] sm:$0xff] }
  0x17   :  { %v2678_v5 = vld [vmem:[#allocation2 + $0xf8] sm:$0xff]  ;;  %606 = vmatpush.bf16.msra.mxu2 %v2670_v2  ;;  %v2677_v7 = vld [vmem:[#allocation2 + $0xf0] sm:$0xff]  ;;  %v2668_v10 = vld [vmem:[#allocation2 + $0xa8] sm:$0xff] }
  0x18   :  { %620 = vmatpush.bf16.msra.mxu3 %v2678_v5  ;;  %v2676_v11 = vld [vmem:[#allocation2 + $0xe8] sm:$0xff]  ;;  %v2651_v12 = vld [vmem:[#allocation2 + $0x20] sm:$0xff]  ;;  %v2650_v16 = vld [vmem:[#allocation2 + $0x18] sm:$0xff] }
  0x19   :  { %579 = vmatpush.bf16.msra.mxu0 %v2653_v3  ;;  %v2659_v13 = vld [vmem:[#allocation2 + $0x60] sm:$0xff]  ;;  %v2658_v17 = vld [vmem:[#allocation2 + $0x58] sm:$0xff]  ;;  %v2649_v20 = vld [vmem:[#allocation2 + $0x10] sm:$0xff] }
  0x1a   :  { %593 = vmatpush.bf16.msra.mxu1 %v2661_v4  ;;  %v2667_v14 = vld [vmem:[#allocation2 + $0xa0] sm:$0xff]  ;;  %v2666_v18 = vld [vmem:[#allocation2 + $0x98] sm:$0xff]  ;;  %v2657_v21 = vld [vmem:[#allocation2 + $0x50] sm:$0xff] }
  0x1b   :  { %607 = vmatpush.bf16.msra.mxu2 %v2669_v6  ;;  %v2675_v15 = vld [vmem:[#allocation2 + $0xe0] sm:$0xff]  ;;  %v2674_v19 = vld [vmem:[#allocation2 + $0xd8] sm:$0xff]  ;;  %v2665_v22 = vld [vmem:[#allocation2 + $0x90] sm:$0xff] }
  0x1c   :  { %621 = vmatpush.bf16.msra.mxu3 %v2677_v7  ;;  %v2673_v23 = vld [vmem:[#allocation2 + $0xd0] sm:$0xff]  ;;  %v2648_v24 = vld [vmem:[#allocation2 + $0x8] sm:$0xff]  ;;  %v2647_v27 = vld [vmem:[#allocation2] sm:$0xff] }
  0x1d   :  { %580 = vmatpush.bf16.msra.mxu0 %v2652_v8  ;;  %v2656_v25 = vld [vmem:[#allocation2 + $0x48] sm:$0xff]  ;;  %v2655_v29 = vld [vmem:[#allocation2 + $0x40] sm:$0xff]  ;;  %v2686_v31 = vld [vmem:[#allocation2 + $0x138] sm:$0xff] }
  0x1e   :  { %594 = vmatpush.bf16.msra.mxu1 %v2660_v9  ;;  %v2664_v26 = vld [vmem:[#allocation2 + $0x88] sm:$0xff]  ;;  %v2663_v30 = vld [vmem:[#allocation2 + $0x80] sm:$0xff]  ;;  %v2643_v34 = vld [vmem:[%s3129_s0 + $0x18] sm:$0xf0] }
  0x1f   :  { %608 = vmatpush.bf16.msra.mxu2 %v2668_v10  ;;  %v2672_v28 = vld [vmem:[#allocation2 + $0xc8] sm:$0xff]  ;;  %v1910_v33 = vld [vmem:[%s3129_s0] sm:$0xf]  ;;  %v2644_v35 = vld [vmem:[%s3129_s0 + $0x20] sm:$0xf0] }
  0x20   :  { %622 = vmatpush.bf16.msra.mxu3 %v2676_v11  ;;  %v1918_v32 = vld [vmem:[%s3129_s0 + $0x8] sm:$0xf]  ;;  %v2640_v36 = vld [vmem:[%s3129_s0 + $0x4] sm:$0xf]  ;;  %v1912_v37 = vld [vmem:[%s3129_s0 + $0x1c] sm:$0xf0]  ;;  %v1911_v41 = vor.u32 %v2643_v34, %v1910_v33 }
  0x21   :  { %581 = vmatpush.bf16.msra.mxu0 %v2651_v12  ;;  %v2694_v38 = vld [vmem:[#allocation2 + $0x178] sm:$0xff]  ;;  %v2671_v40 = vld [vmem:[#allocation2 + $0xc0] sm:$0xff]  ;;  %v1919_v42 = vor.u32 %v2644_v35, %v1918_v32  ;;  %v2641_v43 = vld [vmem:[%s3129_s0 + $0xc] sm:$0xf]  ;;  %v1915_v45 = vor.u32 %v2640_v36, %v1912_v37 }
  0x22   :  { %595 = vmatpush.bf16.msra.mxu1 %v2659_v13  ;;  %v2702_v39 = vld [vmem:[#allocation2 + $0x1b8] sm:$0xff]  ;;  %v1920_v44 = vld [vmem:[%s3129_s0 + $0x24] sm:$0xf0]  ;;  %v2685_v46 = vld [vmem:[#allocation2 + $0x130] sm:$0xff] }
  0x23   :  { %609 = vmatpush.bf16.msra.mxu2 %v2667_v14  ;;  %v2693_v47 = vld [vmem:[#allocation2 + $0x170] sm:$0xff]  ;;  %v1923_v49 = vor.u32 %v2641_v43, %v1920_v44  ;;  %v2684_v50 = vld [vmem:[#allocation2 + $0x128] sm:$0xff]  ;;  %v2683_v53 = vld [vmem:[#allocation2 + $0x120] sm:$0xff] }
  0x24   :  { %623 = vmatpush.bf16.msra.mxu3 %v2675_v15  ;;  %v2701_v48 = vld [vmem:[#allocation2 + $0x1b0] sm:$0xff]  ;;  %v2692_v51 = vld [vmem:[#allocation2 + $0x168] sm:$0xff]  ;;  %v2691_v54 = vld [vmem:[#allocation2 + $0x160] sm:$0xff] }
  0x25   :  { %582 = vmatpush.bf16.msra.mxu0 %v2650_v16  ;;  %v2700_v52 = vld [vmem:[#allocation2 + $0x1a8] sm:$0xff]  ;;  %v2699_v55 = vld [vmem:[#allocation2 + $0x1a0] sm:$0xff]  ;;  %v2682_v56 = vld [vmem:[#allocation2 + $0x118] sm:$0xff] }
  0x26   :  { %596 = vmatpush.bf16.msra.mxu1 %v2658_v17  ;;  %v2690_v57 = vld [vmem:[#allocation2 + $0x158] sm:$0xff]  ;;  %v2681_v59 = vld [vmem:[#allocation2 + $0x110] sm:$0xff]  ;;  %v2680_v62 = vld [vmem:[#allocation2 + $0x108] sm:$0xff] }
  0x27   :  { %610 = vmatpush.bf16.msra.mxu2 %v2666_v18  ;;  %v2698_v58 = vld [vmem:[#allocation2 + $0x198] sm:$0xff]  ;;  %v2689_v60 = vld [vmem:[#allocation2 + $0x150] sm:$0xff]  ;;  %v2688_v63 = vld [vmem:[#allocation2 + $0x148] sm:$0xff] }
  0x28   :  { %624 = vmatpush.bf16.msra.mxu3 %v2674_v19  ;;  %v2697_v61 = vld [vmem:[#allocation2 + $0x190] sm:$0xff]  ;;  %v2696_v0 = vld [vmem:[#allocation2 + $0x188] sm:$0xff]  ;;  %v2679_v1 = vld [vmem:[#allocation2 + $0x100] sm:$0xff] }
  0x29   :  { %583 = vmatpush.bf16.msra.mxu0 %v2649_v20  ;;  %v2687_v2 = vld [vmem:[#allocation2 + $0x140] sm:$0xff]  ;;  %v1926_v4 = vld [vmem:[%s3129_s0 + $0x10] sm:$0xf]  ;;  %v2645_v5 = vld [vmem:[%s3129_s0 + $0x28] sm:$0xf0] }
  0x2a   :  { %597 = vmatpush.bf16.msra.mxu1 %v2657_v21  ;;  %v2695_v3 = vld [vmem:[#allocation2 + $0x180] sm:$0xff]  ;;  %v2642_v6 = vld [vmem:[%s3129_s0 + $0x14] sm:$0xf]  ;;  %v1928_v7 = vld [vmem:[%s3129_s0 + $0x2c] sm:$0xf0]  ;;  %v1927_v10 = vor.u32 %v2645_v5, %v1926_v4 }
  0x2b   :  { %611 = vmatpush.bf16.msra.mxu2 %v2665_v22  ;;  %v1934_v8 = vld [vmem:[%s3129_s0 + $0x18] sm:$0xf]  ;;  %v2646_v9 = vld [vmem:[%s3129_s0 + $0x30] sm:$0xf0]  ;;  %v1931_v11 = vor.u32 %v2642_v6, %v1928_v7  ;;  %v2708_v15 = vld [vmem:[#allocation4 + $0x28] sm:$0xff] }
  0x2c   :  { %625 = vmatpush.bf16.msra.mxu3 %v2673_v23  ;;  %v1935_v12 = vor.u32 %v2646_v9, %v1934_v8  ;;  %v2710_v13 = vld [vmem:[#allocation4 + $0x38] sm:$0xff]  ;;  %v2709_v14 = vld [vmem:[#allocation4 + $0x30] sm:$0xff]  ;;  %v2707_v16 = vld [vmem:[#allocation4 + $0x20] sm:$0xff] }
  0x2d   :  { %584 = vmatpush.bf16.msra.mxu0 %v2648_v24  ;;  %v2706_v17 = vld [vmem:[#allocation4 + $0x18] sm:$0xff]  ;;  %v2705_v18 = vld [vmem:[#allocation4 + $0x10] sm:$0xff]  ;;  %v2704_v19 = vld [vmem:[#allocation4 + $0x8] sm:$0xff] }
  0x2e   :  { %598 = vmatpush.bf16.msra.mxu1 %v2656_v25  ;;  %v2703_v22 = vld [vmem:[#allocation4] sm:$0xff]  ;;  %v2718_v24 = vld [vmem:[#allocation4 + $0x78] sm:$0xff]  ;;  %v2716_v32 = vld [vmem:[#allocation4 + $0x68] sm:$0xff] }
  0x2f   :  { %612 = vmatpush.bf16.msra.mxu2 %v2664_v26  ;;  %v205_v25 = vld [vmem:[#allocation7] ss:$0 sm:$0xff]  ;;  %v2722_v9 = vld [vmem:[#allocation4 + $0x98] sm:$0xff] }
  0x30   :  { %626 = vmatpush.bf16.msra.mxu3 %v2672_v28  ;;  %v2715_v37 = vld [vmem:[#allocation4 + $0x60] sm:$0xff] }
  0x31   :  { %585 = vmatpush.bf16.msra.mxu0 %v2647_v27  ;;  %v2717_v27 = vld [vmem:[#allocation4 + $0x70] sm:$0xff] }
  0x32   :  { %599 = vmatpush.bf16.msra.mxu1 %v2655_v29 }
  0x33   :  { %613 = vmatpush.bf16.msra.mxu2 %v2663_v30 }
  0x34   :  { %627 = vmatpush.bf16.msra.mxu3 %v2671_v40  ;;  %586 = vmatmul.bf16.vlgmr.msra.gmra.mxu0 %v1911_v41 }
  0x35   :  { %634 = vmatpush.bf16.msrb.mxu0 %v2686_v31  ;;  %600 = vmatmul.bf16.vlgmr.msra.gmra.mxu1 %v1915_v45 }
  0x36   :  { %648 = vmatpush.bf16.msrb.mxu1 %v2694_v38  ;;  %614 = vmatmul.bf16.vlgmr.msra.gmra.mxu2 %v1919_v42 }
  0x37   :  { %662 = vmatpush.bf16.msrb.mxu2 %v2702_v39  ;;  %628 = vmatmul.bf16.vlgmr.msra.gmra.mxu3 %v1923_v49 }
  0x38   :  { %744 = vmatpush.bf16.msrb.mxu3 %v2710_v13  ;;  %v2734_v13 = vld [vmem:[#allocation4 + $0xf8] sm:$0xff] }
  0x39   :  { %635 = vmatpush.bf16.msrb.mxu0 %v2685_v46 }
  0x3a   :  { %649 = vmatpush.bf16.msrb.mxu1 %v2693_v47 }
  0x3b   :  { %663 = vmatpush.bf16.msrb.mxu2 %v2701_v48 }
  0x3c   :  { %745 = vmatpush.bf16.msrb.mxu3 %v2709_v14  ;;  %v2733_v14 = vld [vmem:[#allocation4 + $0xf0] sm:$0xff] }
  0x3d   :  { %636 = vmatpush.bf16.msrb.mxu0 %v2684_v50 }
  0x3e   :  { %650 = vmatpush.bf16.msrb.mxu1 %v2692_v51 }
  0x3f   :  { %664 = vmatpush.bf16.msrb.mxu2 %v2700_v52 }
  0x40   :  { %746 = vmatpush.bf16.msrb.mxu3 %v2708_v15  ;;  %v2732_v15 = vld [vmem:[#allocation4 + $0xe8] sm:$0xff] }
  0x41   :  { %637 = vmatpush.bf16.msrb.mxu0 %v2683_v53 }
  0x42   :  { %651 = vmatpush.bf16.msrb.mxu1 %v2691_v54 }
  0x43   :  { %665 = vmatpush.bf16.msrb.mxu2 %v2699_v55 }
  0x44   :  { %747 = vmatpush.bf16.msrb.mxu3 %v2707_v16  ;;  %v2731_v16 = vld [vmem:[#allocation4 + $0xe0] sm:$0xff] }
  0x45   :  { %638 = vmatpush.bf16.msrb.mxu0 %v2682_v56 }
  0x46   :  { %652 = vmatpush.bf16.msrb.mxu1 %v2690_v57  ;;  %v2714_v57 = vld [vmem:[#allocation4 + $0x58] sm:$0xff] }
  0x47   :  { %666 = vmatpush.bf16.msrb.mxu2 %v2698_v58  ;;  %v2713_v58 = vld [vmem:[#allocation4 + $0x50] sm:$0xff] }
  0x48   :  { %748 = vmatpush.bf16.msrb.mxu3 %v2706_v17 }
  0x49   :  { %639 = vmatpush.bf16.msrb.mxu0 %v2681_v59  ;;  %v2712_v59 = vld [vmem:[#allocation4 + $0x48] sm:$0xff] }
  0x4a   :  { %653 = vmatpush.bf16.msrb.mxu1 %v2689_v60  ;;  %v2711_v60 = vld [vmem:[#allocation4 + $0x40] sm:$0xff] }
  0x4b   :  { %667 = vmatpush.bf16.msrb.mxu2 %v2697_v61  ;;  %v2726_v61 = vld [vmem:[#allocation4 + $0xb8] sm:$0xff] }
  0x4c   :  { %749 = vmatpush.bf16.msrb.mxu3 %v2705_v18  ;;  %v778_v18 = vld [vmem:[#allocation7 + $0x2] ss:$0 sm:$0xff] }
  0x4d   :  { %640 = vmatpush.bf16.msrb.mxu0 %v2680_v62  ;;  %v2725_v62 = vld [vmem:[#allocation4 + $0xb0] sm:$0xff] }
  0x4e   :  { %654 = vmatpush.bf16.msrb.mxu1 %v2688_v63  ;;  %v2724_v63 = vld [vmem:[#allocation4 + $0xa8] sm:$0xff] }
  0x4f   :  { %668 = vmatpush.bf16.msrb.mxu2 %v2696_v0  ;;  %v2723_v0 = vld [vmem:[#allocation4 + $0xa0] sm:$0xff] }
  0x50   :  { %750 = vmatpush.bf16.msrb.mxu3 %v2704_v19 }
  0x51   :  { %641 = vmatpush.bf16.msrb.mxu0 %v2679_v1 }
  0x52   :  { %655 = vmatpush.bf16.msrb.mxu1 %v2687_v2  ;;  %v695_v2 = vld [vmem:[#allocation7 + $0x1] ss:$0 sm:$0xff] }
  0x53   :  { %669 = vmatpush.bf16.msrb.mxu2 %v2695_v3 }
  0x54   :  { %642 = vmatmul.bf16.vlgmr.msrb.gmra.mxu0 %v1927_v10  ;;  %751 = vmatpush.bf16.msrb.mxu3 %v2703_v22  ;;  %v2721_v10 = vld [vmem:[#allocation4 + $0x90] sm:$0xff] }
  0x55   :  { %656 = vmatmul.bf16.vlgmr.msrb.gmra.mxu1 %v1931_v11  ;;  %827 = vmatpush.bf16.msra.mxu0 %v2718_v24  ;;  %v2720_v11 = vld [vmem:[#allocation4 + $0x88] sm:$0xff] }
  0x56   :  { %670 = vmatmul.bf16.vlgmr.msrb.gmra.mxu2 %v1935_v12  ;;  %910 = vmatpush.bf16.msra.mxu1 %v2726_v61  ;;  %v2719_v12 = vld [vmem:[#allocation4 + $0x80] sm:$0xff]  ;;  %v2756_v61 = vld [vmem:[#allocation4 + $0x1a8] sm:$0xff] }
  0x57   :  { %993 = vmatpush.bf16.msra.mxu2 %v2734_v13  ;;  %v2764_v13 = vld [vmem:[#allocation4 + $0x1e8] sm:$0xff] }
  0x59   :  { %828 = vmatpush.bf16.msra.mxu0 %v2717_v27  ;;  %v2728_v27 = vld [vmem:[#allocation4 + $0xc8] sm:$0xff] }
  0x5a   :  { %911 = vmatpush.bf16.msra.mxu1 %v2725_v62  ;;  %v2755_v62 = vld [vmem:[#allocation4 + $0x1a0] sm:$0xff] }
  0x5b   :  { %994 = vmatpush.bf16.msra.mxu2 %v2733_v14  ;;  %v2763_v14 = vld [vmem:[#allocation4 + $0x1e0] sm:$0xff] }
  0x5d   :  { %829 = vmatpush.bf16.msra.mxu0 %v2716_v32  ;;  %v2739_v32 = vld [vmem:[#allocation4 + $0x120] sm:$0xff] }
  0x5e   :  { %912 = vmatpush.bf16.msra.mxu1 %v2724_v63 }
  0x5f   :  { %995 = vmatpush.bf16.msra.mxu2 %v2732_v15 }
  0x61   :  { %830 = vmatpush.bf16.msra.mxu0 %v2715_v37 }
  0x62   :  { %913 = vmatpush.bf16.msra.mxu1 %v2723_v0  ;;  %v1027_v0 = vld [vmem:[#allocation7 + $0x5] ss:$0 sm:$0xff] }
  0x63   :  { %996 = vmatpush.bf16.msra.mxu2 %v2731_v16  ;;  %v1110_v16 = vld [vmem:[#allocation7 + $0x6] ss:$0 sm:$0xff] }
  0x65   :  { %831 = vmatpush.bf16.msra.mxu0 %v2714_v57  ;;  %v2744_v57 = vld [vmem:[#allocation4 + $0x148] sm:$0xff] }
  0x66   :  { %914 = vmatpush.bf16.msra.mxu1 %v2722_v9  ;;  %v2752_v9 = vld [vmem:[#allocation4 + $0x188] sm:$0xff] }
  0x69   :  { %832 = vmatpush.bf16.msra.mxu0 %v2713_v58  ;;  %v2743_v58 = vld [vmem:[#allocation4 + $0x140] sm:$0xff] }
  0x6a   :  { %915 = vmatpush.bf16.msra.mxu1 %v2721_v10  ;;  %v2751_v10 = vld [vmem:[#allocation4 + $0x180] sm:$0xff] }
  0x6d   :  { %833 = vmatpush.bf16.msra.mxu0 %v2712_v59  ;;  %v2758_v59 = vld [vmem:[#allocation4 + $0x1b8] sm:$0xff] }
  0x6e   :  { %916 = vmatpush.bf16.msra.mxu1 %v2720_v11  ;;  %v2766_v11 = vld [vmem:[#allocation4 + $0x1f8] sm:$0xff] }
  0x71   :  { %834 = vmatpush.bf16.msra.mxu0 %v2711_v60  ;;  %v2757_v60 = vld [vmem:[#allocation4 + $0x1b0] sm:$0xff] }
  0x72   :  { %917 = vmatpush.bf16.msra.mxu1 %v2719_v12  ;;  %v2765_v12 = vld [vmem:[#allocation4 + $0x1f0] sm:$0xff] }
  0x76   :  { %1242 = vmatpush.bf16.msrb.mxu1 %v2758_v59  ;;  %v2532_v59 = vld [vmem:[#allocation6 + $0xfc] sm:$0xf0] }
  0x7a   :  { %1243 = vmatpush.bf16.msrb.mxu1 %v2757_v60  ;;  %v2538_v60 = vld [vmem:[#allocation6 + $0xe8] sm:$0xf] }
  0x7e   :  { %1244 = vmatpush.bf16.msrb.mxu1 %v2756_v61  ;;  %v2799_v61 = vld [vmem:[#allocation6 + $0x100] sm:$0xf0] }
  0x82   :  { %1245 = vmatpush.bf16.msrb.mxu1 %v2755_v62 }
  0xb1   :  { %v587_v20 = vpop.f32.mrf.mxu0 }
  0xb2   :  { %v601_v21 = vpop.f32.mrf.mxu1  ;;  %v588_v28 = vadd.f32 %v587_v20, %v205_v25 }
  0xb4   :  { %v602_v33 = vadd.f32 %v601_v21, %v588_v28  ;;  %v2727_v28 = vld [vmem:[#allocation4 + $0xc0] sm:$0xff] }
  0xb9   :  { %v615_v23 = vpop.f32.mrf.mxu2  ;;  %v589_v26 = vpop.f32.mrf.mxu0 }
  0xba   :  { %v629_v29 = vpop.f32.mrf.mxu3  ;;  %v603_v30 = vpop.f32.mrf.mxu1  ;;  %v590_v31 = vadd.f32 %v589_v26, %v205_v25  ;;  %v616_v38 = vadd.f32 %v615_v23, %v602_v33  ;;  %v2730_v25 = vld [vmem:[#allocation4 + $0xd8] sm:$0xff]  ;;  %v2729_v26 = vld [vmem:[#allocation4 + $0xd0] sm:$0xff] }
  0xbb   :  { %997 = vmatpush.bf16.msra.mxu2 %v2730_v25  ;;  %v2738_v33 = vld [vmem:[#allocation4 + $0x118] sm:$0xff]  ;;  %v2760_v25 = vld [vmem:[#allocation4 + $0x1c8] sm:$0xff] }
  0xbc   :  { %v604_v35 = vadd.f32 %v603_v30, %v590_v31  ;;  %v630_v42 = vadd.f32 %v629_v29, %v616_v38  ;;  %v2742_v29 = vld [vmem:[#allocation4 + $0x138] sm:$0xff]  ;;  %v2741_v30 = vld [vmem:[#allocation4 + $0x130] sm:$0xff]  ;;  %v2740_v31 = vld [vmem:[#allocation4 + $0x128] sm:$0xff] }
  0xbd   :  { %1076 = vmatpush.bf16.msra.mxu3 %v2742_v29  ;;  %v2816_v29 = vld [vmem:[#allocation6 + $0x18c] sm:$0xf] }
  0xbf   :  { %998 = vmatpush.bf16.msra.mxu2 %v2729_v26  ;;  %v2759_v26 = vld [vmem:[#allocation4 + $0x1c0] sm:$0xff] }
  0xc1   :  { %v617_v34 = vpop.f32.mrf.mxu2  ;;  %1077 = vmatpush.bf16.msra.mxu3 %v2741_v30 }
  0xc2   :  { %v618_v40 = vadd.f32 %v617_v34, %v604_v35  ;;  %v631_v41 = vpop.f32.mrf.mxu3  ;;  %v861_v35 = vld [vmem:[#allocation7 + $0x3] ss:$0 sm:$0xff] }
  0xc3   :  { %999 = vmatpush.bf16.msra.mxu2 %v2728_v27  ;;  %v2614_v27 = vld [vmem:[#allocation6 + $0x188] sm:$0xf] }
  0xc4   :  { %v632_v44 = vadd.f32 %v631_v41, %v618_v40 }
  0xc5   :  { %1078 = vmatpush.bf16.msra.mxu3 %v2740_v31  ;;  %v2616_v31 = vld [vmem:[#allocation6 + $0x1a4] sm:$0xf0] }
  0xc7   :  { %1000 = vmatpush.bf16.msra.mxu2 %v2727_v28  ;;  %v2819_v28 = vld [vmem:[#allocation6 + $0x1a0] sm:$0xf0] }
  0xc8   :  { %v2615_v30 = vor.u32 %v2819_v28, %v2614_v27 }
  0xc9   :  { %1079 = vmatpush.bf16.msra.mxu3 %v2739_v32  ;;  %v2622_v32 = vld [vmem:[#allocation6 + $0x190] sm:$0xf] }
  0xcb   :  { %1325 = vmatpush.bf16.msrb.mxu2 %v2766_v11  ;;  %v2803_v11 = vld [vmem:[#allocation6 + $0x124] sm:$0xf] }
  0xcd   :  { %1080 = vmatpush.bf16.msra.mxu3 %v2738_v33  ;;  %v2820_v33 = vld [vmem:[#allocation6 + $0x1a8] sm:$0xf0] }
  0xcf   :  { %1326 = vmatpush.bf16.msrb.mxu2 %v2765_v12  ;;  %v2568_v12 = vld [vmem:[#allocation6 + $0x13c] sm:$0xf0] }
  0xd1   :  { %v643_v36 = vpop.f32.mrf.mxu0 }
  0xd2   :  { %v657_v39 = vpop.f32.mrf.mxu1  ;;  %v644_v45 = vadd.f32 %v643_v36, %v630_v42  ;;  %v2737_v42 = vld [vmem:[#allocation4 + $0x110] sm:$0xff] }
  0xd3   :  { %1081 = vmatpush.bf16.msra.mxu3 %v2737_v42  ;;  %1327 = vmatpush.bf16.msrb.mxu2 %v2764_v13  ;;  %v2813_v42 = vld [vmem:[#allocation6 + $0x170] sm:$0xf0] }
  0xd4   :  { %v658_v48 = vadd.f32 %v657_v39, %v644_v45  ;;  %v2750_v45 = vld [vmem:[#allocation4 + $0x178] sm:$0xff] }
  0xd5   :  { %1159 = vmatpush.bf16.msrb.mxu0 %v2750_v45  ;;  %v2558_v45 = vld [vmem:[#allocation6 + $0x118] sm:$0xf] }
  0xd7   :  { %1328 = vmatpush.bf16.msrb.mxu2 %v2763_v14  ;;  %v2474_v14 = vld [vmem:[#allocation6 + $0x70] sm:$0xf] }
  0xd9   :  { %v671_v43 = vpop.f32.mrf.mxu2  ;;  %v645_v46 = vpop.f32.mrf.mxu0 }
  0xda   :  { %v646_v47 = vadd.f32 %v645_v46, %v632_v44  ;;  %v659_v49 = vpop.f32.mrf.mxu1  ;;  %v672_v50 = vadd.f32 %v671_v43, %v658_v48  ;;  %v2736_v43 = vld [vmem:[#allocation4 + $0x108] sm:$0xff]  ;;  %v2735_v44 = vld [vmem:[#allocation4 + $0x100] sm:$0xff]  ;;  %v2749_v46 = vld [vmem:[#allocation4 + $0x170] sm:$0xff] }
  0xdb   :  { %1082 = vmatpush.bf16.msra.mxu3 %v2736_v43  ;;  %1160 = vmatpush.bf16.msrb.mxu0 %v2749_v46  ;;  %v2747_v48 = vld [vmem:[#allocation4 + $0x160] sm:$0xff]  ;;  %v2805_v46 = vld [vmem:[#allocation6 + $0x130] sm:$0xf0] }
  0xdc   :  { %v660_v51 = vadd.f32 %v659_v49, %v646_v47  ;;  %v676_v54 = vmax.f32 %v672_v50, 0.0  ;;  %v2748_v47 = vld [vmem:[#allocation4 + $0x168] sm:$0xff]  ;;  %v944_v49 = vld [vmem:[#allocation7 + $0x4] ss:$0 sm:$0xff] }
  0xdf   :  { %1083 = vmatpush.bf16.msra.mxu3 %v2735_v44  ;;  %1161 = vmatpush.bf16.msrb.mxu0 %v2748_v47  ;;  %v2802_v47 = vld [vmem:[#allocation6 + $0x11c] sm:$0xf] }
  0xe1   :  { %v673_v52 = vpop.f32.mrf.mxu2 }
  0xe2   :  { %v674_v53 = vadd.f32 %v673_v52, %v660_v51 }
  0xe3   :  { %1162 = vmatpush.bf16.msrb.mxu0 %v2747_v48  ;;  %v2560_v48 = vld [vmem:[#allocation6 + $0x134] sm:$0xf0] }
  0xe4   :  { %v677_v55 = vmax.f32 %v674_v53, 0.0 }
  0xe6   :  { %v678_v56 = vpack.c.bf16 %v677_v55, %v676_v54  ;;  %v2746_v55 = vld [vmem:[#allocation4 + $0x158] sm:$0xff] }
  0xe7   :  { %1163 = vmatpush.bf16.msrb.mxu0 %v2746_v55 }
  0xe8   :  { %752 = vmatmul.bf16.vlgmr.msrb.gmra.mxu3 %v678_v56  ;;  %v2745_v56 = vld [vmem:[#allocation4 + $0x150] sm:$0xff] }
  0xe9   :  { %1713 = vmatpush.bf16.msrb.mxu3 %v2615_v30 }
  0xeb   :  { %1164 = vmatpush.bf16.msrb.mxu0 %v2745_v56  ;;  %v2795_v56 = vld [vmem:[#allocation6 + $0xe4] sm:$0xf] }
  0xef   :  { %1165 = vmatpush.bf16.msrb.mxu0 %v2744_v57  ;;  %v2817_v57 = vld [vmem:[#allocation6 + $0x194] sm:$0xf] }
  0xf3   :  { %1166 = vmatpush.bf16.msrb.mxu0 %v2743_v58  ;;  %v2624_v58 = vld [vmem:[#allocation6 + $0x1ac] sm:$0xf0] }
  0xf4   :  { %v2627_v62 = vor.u32 %v2817_v57, %v2624_v58  ;;  %v2630_v57 = vld [vmem:[#allocation6 + $0x198] sm:$0xf] }
 0x16b   :  { %v753_v1 = vpop.f32.mrf.mxu3 }
 0x16c   :  { %v754_v3 = vadd.f32 %v753_v1, %v695_v2 }
 0x16e   :  { %v758_v6 = vmax.f32 %v754_v3, 0.0 }
 0x173   :  { %v755_v4 = vpop.f32.mrf.mxu3 }
 0x174   :  { %v756_v5 = vadd.f32 %v755_v4, %v695_v2 }
 0x176   :  { %v759_v7 = vmax.f32 %v756_v5, 0.0 }
 0x178   :  { %v760_v8 = vpack.c.bf16 %v759_v7, %v758_v6  ;;  %v2754_v7 = vld [vmem:[#allocation4 + $0x198] sm:$0xff] }
 0x179   :  { %1246 = vmatpush.bf16.msrb.mxu1 %v2754_v7  ;;  %v2504_v7 = vld [vmem:[#allocation6 + $0xc4] sm:$0xf0] }
 0x17a   :  { %835 = vmatmul.bf16.vlgmr.msra.gmra.mxu0 %v760_v8  ;;  %v2753_v8 = vld [vmem:[#allocation4 + $0x190] sm:$0xff] }
 0x17d   :  { %1247 = vmatpush.bf16.msrb.mxu1 %v2753_v8  ;;  %v2510_v8 = vld [vmem:[#allocation6 + $0xb0] sm:$0xf] }
 0x181   :  { %1248 = vmatpush.bf16.msrb.mxu1 %v2752_v9 }
 0x185   :  { %1249 = vmatpush.bf16.msrb.mxu1 %v2751_v10  ;;  %v2792_v10 = vld [vmem:[#allocation6 + $0xc8] sm:$0xf0] }
 0x1f7   :  { %v836_v17 = vpop.f32.mrf.mxu0 }
 0x1f8   :  { %v837_v19 = vadd.f32 %v836_v17, %v778_v18 }
 0x1fa   :  { %v841_v22 = vmax.f32 %v837_v19, 0.0 }
 0x1ff   :  { %v838_v20 = vpop.f32.mrf.mxu0 }
 0x200   :  { %v839_v21 = vadd.f32 %v838_v20, %v778_v18 }
 0x202   :  { %v842_v23 = vmax.f32 %v839_v21, 0.0 }
 0x204   :  { %v843_v24 = vpack.c.bf16 %v842_v23, %v841_v22  ;;  %v2762_v23 = vld [vmem:[#allocation4 + $0x1d8] sm:$0xff] }
 0x205   :  { %1329 = vmatpush.bf16.msrb.mxu2 %v2762_v23  ;;  %v2476_v23 = vld [vmem:[#allocation6 + $0x8c] sm:$0xf0] }
 0x206   :  { %918 = vmatmul.bf16.vlgmr.msra.gmra.mxu1 %v843_v24  ;;  %v2761_v24 = vld [vmem:[#allocation4 + $0x1d0] sm:$0xff] }
 0x209   :  { %1330 = vmatpush.bf16.msrb.mxu2 %v2761_v24  ;;  %v2482_v24 = vld [vmem:[#allocation6 + $0x78] sm:$0xf] }
 0x20d   :  { %1331 = vmatpush.bf16.msrb.mxu2 %v2760_v25  ;;  %v2785_v25 = vld [vmem:[#allocation6 + $0x90] sm:$0xf0] }
 0x20e   :  { %v2483_v30 = vor.u32 %v2785_v25, %v2482_v24  ;;  %v2582_v24 = vld [vmem:[#allocation6 + $0x130] sm:$0xf]  ;;  %v2808_v25 = vld [vmem:[#allocation6 + $0x148] sm:$0xf0] }
 0x211   :  { %1332 = vmatpush.bf16.msrb.mxu2 %v2759_v26  ;;  %v1193_v26 = vld [vmem:[#allocation7 + $0x7] ss:$0 sm:$0xff] }
 0x283   :  { %v919_v34 = vpop.f32.mrf.mxu1 }
 0x284   :  { %v920_v36 = vadd.f32 %v919_v34, %v861_v35  ;;  %v2619_v34 = vor.u32 %v2816_v29, %v2616_v31  ;;  %v2446_v31 = vld [vmem:[#allocation6 + $0x38] sm:$0xf] }
 0x286   :  { %v924_v39 = vmax.f32 %v920_v36, 0.0  ;;  %v2586_v36 = vld [vmem:[#allocation6 + $0x150] sm:$0xf]  ;;  %1727 = vmatpush.bf16.msra.mxu0 %v2619_v34  ;;  %v2448_v34 = vld [vmem:[#allocation6 + $0x54] sm:$0xf0] }
 0x28b   :  { %v921_v37 = vpop.f32.mrf.mxu1 }
 0x28c   :  { %v922_v38 = vadd.f32 %v921_v37, %v861_v35  ;;  %v2623_v35 = vor.u32 %v2820_v33, %v2622_v32  ;;  %v2812_v37 = vld [vmem:[#allocation6 + $0x168] sm:$0xf0]  ;;  %v2777_v32 = vld [vmem:[#allocation6 + $0x50] sm:$0xf0]  ;;  %v2774_v33 = vld [vmem:[#allocation6 + $0x3c] sm:$0xf] }
 0x28e   :  { %v925_v40 = vmax.f32 %v922_v38, 0.0  ;;  %v2809_v38 = vld [vmem:[#allocation6 + $0x154] sm:$0xf]  ;;  %1741 = vmatpush.bf16.msra.mxu1 %v2623_v35  ;;  %v2454_v35 = vld [vmem:[#allocation6 + $0x40] sm:$0xf] }
 0x290   :  { %v926_v41 = vpack.c.bf16 %v925_v40, %v924_v39  ;;  %v2587_v39 = vor.u32 %v2812_v37, %v2586_v36  ;;  %v2588_v40 = vld [vmem:[#allocation6 + $0x16c] sm:$0xf0]  ;;  %v2778_v36 = vld [vmem:[#allocation6 + $0x58] sm:$0xf0]  ;;  %v2447_v37 = vor.u32 %v2777_v32, %v2446_v31  ;;  %v2800_v31 = vld [vmem:[#allocation6 + $0x108] sm:$0xf0] }
 0x291   :  { %v2591_v43 = vor.u32 %v2809_v38, %v2588_v40  ;;  %v2455_v40 = vor.u32 %v2778_v36, %v2454_v35  ;;  %v2797_v32 = vld [vmem:[#allocation6 + $0xf4] sm:$0xf]  ;;  %v2554_v36 = vld [vmem:[#allocation6 + $0xf8] sm:$0xf] }
 0x292   :  { %1001 = vmatmul.bf16.vlgmr.msra.gmra.mxu2 %v926_v41  ;;  %v2594_v41 = vld [vmem:[#allocation6 + $0x158] sm:$0xf]  ;;  %1714 = vmatpush.bf16.msrb.mxu3 %v2587_v39  ;;  %v2451_v39 = vor.u32 %v2774_v33, %v2448_v34  ;;  %v2548_v33 = vld [vmem:[#allocation6 + $0x10c] sm:$0xf0] }
 0x293   :  { %v2595_v44 = vor.u32 %v2813_v42, %v2594_v41  ;;  %1728 = vmatpush.bf16.msra.mxu0 %v2591_v43  ;;  %1755 = vmatpush.bf16.msra.mxu2 %v2627_v62  ;;  %v2418_v41 = vld [vmem:[#allocation6] sm:$0xf]  ;;  %v2770_v42 = vld [vmem:[#allocation6 + $0x18] sm:$0xf0]  ;;  %v2551_v35 = vor.u32 %v2797_v32, %v2548_v33 }
 0x295   :  { %1742 = vmatpush.bf16.msra.mxu1 %v2595_v44  ;;  %v2767_v44 = vld [vmem:[#allocation6 + $0x4] sm:$0xf] }
 0x315   :  { %v1002_v50 = vpop.f32.mrf.mxu2 }
 0x316   :  { %v1003_v51 = vadd.f32 %v1002_v50, %v944_v49  ;;  %v2806_v50 = vld [vmem:[#allocation6 + $0x138] sm:$0xf0] }
 0x318   :  { %1007 = vst [vmem:[%s3134_s5] sm:$0xff] %v1003_v51 }
 0x31d   :  { %v1004_v52 = vpop.f32.mrf.mxu2 }
 0x31e   :  { %v1005_v53 = vadd.f32 %v1004_v52, %v944_v49  ;;  %v2566_v49 = vld [vmem:[#allocation6 + $0x120] sm:$0xf] }
 0x31f   :  { %v2530_v52 = vld [vmem:[#allocation6 + $0xe0] sm:$0xf]  ;;  %v2567_v55 = vor.u32 %v2806_v50, %v2566_v49  ;;  %v2419_v49 = vor.u32 %v2770_v42, %v2418_v41  ;;  %v2790_v41 = vld [vmem:[#allocation6 + $0xbc] sm:$0xf] }
 0x320   :  { %1008 = vst [vmem:[%s3134_s5 + $0x8] sm:$0xff] %v1005_v53  ;;  %v1009_v54 = vpack.c.bf16 %v1005_v53, %v1003_v51  ;;  %v2559_v51 = vor.u32 %v2805_v46, %v2558_v45  ;;  %v2798_v53 = vld [vmem:[#allocation6 + $0xf8] sm:$0xf0]  ;;  %v2420_v45 = vld [vmem:[#allocation6 + $0x1c] sm:$0xf0] }
 0x321   :  { %1743 = vmatpush.bf16.msra.mxu1 %v2567_v55  ;;  %v2789_v55 = vld [vmem:[#allocation6 + $0xb4] sm:$0xf] }
 0x322   :  { %1084 = vmatmul.bf16.vlgmr.msra.gmra.mxu3 %v1009_v54  ;;  %v2563_v54 = vor.u32 %v2802_v47, %v2560_v48  ;;  %v2426_v47 = vld [vmem:[#allocation6 + $0x8] sm:$0xf]  ;;  %v2771_v48 = vld [vmem:[#allocation6 + $0x20] sm:$0xf0] }
 0x323   :  { %1715 = vmatpush.bf16.msrb.mxu3 %v2559_v51 }
 0x324   :  { %1729 = vmatpush.bf16.msra.mxu0 %v2563_v54 }
 0x3a5   :  { %v1085_v63 = vpop.f32.mrf.mxu3 }
 0x3a6   :  { %v1086_v1 = vadd.f32 %v1085_v63, %v1027_v0  ;;  %v2810_v63 = vld [vmem:[#allocation6 + $0x15c] sm:$0xf] }
 0x3a8   :  { %v1090_v4 = vmax.f32 %v1086_v1, 0.0  ;;  %v2502_v1 = vld [vmem:[#allocation6 + $0xa8] sm:$0xf] }
 0x3ad   :  { %v1087_v2 = vpop.f32.mrf.mxu3 }
 0x3ae   :  { %v1088_v3 = vadd.f32 %v1087_v2, %v1027_v0  ;;  %v2531_v0 = vor.u32 %v2798_v53, %v2530_v52  ;;  %v2791_v2 = vld [vmem:[#allocation6 + $0xc0] sm:$0xf0]  ;;  %v2423_v52 = vor.u32 %v2767_v44, %v2420_v45  ;;  %v2427_v53 = vor.u32 %v2771_v48, %v2426_v47  ;;  %v2526_v44 = vld [vmem:[#allocation6 + $0xc0] sm:$0xf]  ;;  %v2794_v45 = vld [vmem:[#allocation6 + $0xd8] sm:$0xf0] }
 0x3af   :  { %v2503_v13 = vor.u32 %v2791_v2, %v2502_v1  ;;  %v2822_v1 = vld [vmem:[#allocation6 + $0x1b8] sm:$0xf0]  ;;  %v2527_v47 = vor.u32 %v2794_v45, %v2526_v44  ;;  %v2490_v48 = vld [vmem:[#allocation6 + $0x80] sm:$0xf] }
 0x3b0   :  { %v1091_v5 = vmax.f32 %v1088_v3, 0.0  ;;  %v2596_v3 = vld [vmem:[#allocation6 + $0x174] sm:$0xf0]  ;;  %1716 = vmatpush.bf16.msrb.mxu3 %v2531_v0  ;;  %v2638_v0 = vld [vmem:[#allocation6 + $0x1a0] sm:$0xf] }
 0x3b1   :  { %v2599_v9 = vor.u32 %v2810_v63, %v2596_v3  ;;  %v2639_v2 = vor.u32 %v2822_v1, %v2638_v0  ;;  %v2782_v3 = vld [vmem:[#allocation6 + $0x7c] sm:$0xf] }
 0x3b2   :  { %v1092_v6 = vpack.c.bf16 %v1091_v5, %v1090_v4  ;;  %v2535_v4 = vor.u32 %v2795_v56, %v2532_v59  ;;  %v2539_v5 = vor.u32 %v2799_v61, %v2538_v60  ;;  %v2512_v56 = vld [vmem:[#allocation6 + $0xcc] sm:$0xf0]  ;;  %v2821_v59 = vld [vmem:[#allocation6 + $0x1b0] sm:$0xf0]  ;;  %v2818_v60 = vld [vmem:[#allocation6 + $0x19c] sm:$0xf] }
 0x3b3   :  { %1756 = vmatpush.bf16.msra.mxu2 %v2599_v9  ;;  %v2515_v58 = vor.u32 %v2789_v55, %v2512_v56  ;;  %v2632_v61 = vld [vmem:[#allocation6 + $0x1b4] sm:$0xf0]  ;;  %v2631_v62 = vor.u32 %v2821_v59, %v2630_v57  ;;  %v2604_v9 = vld [vmem:[#allocation6 + $0x17c] sm:$0xf0]  ;;  %v2462_v57 = vld [vmem:[#allocation6 + $0x48] sm:$0xf] }
 0x3b4   :  { %1167 = vmatmul.bf16.vlgmr.msrb.gmra.mxu0 %v1092_v6  ;;  %v2788_v6 = vld [vmem:[#allocation6 + $0xac] sm:$0xf]  ;;  %1744 = vmatpush.bf16.msra.mxu1 %v2539_v5  ;;  %v2635_v63 = vor.u32 %v2818_v60, %v2632_v61  ;;  %v2602_v5 = vld [vmem:[#allocation6 + $0x160] sm:$0xf]  ;;  %v2464_v60 = vld [vmem:[#allocation6 + $0x64] sm:$0xf0] }
 0x3b5   :  { %1730 = vmatpush.bf16.msra.mxu0 %v2535_v4  ;;  %1717 = vmatpush.bf16.msrb.mxu3 %v2503_v13  ;;  %v2484_v4 = vld [vmem:[#allocation6 + $0x94] sm:$0xf0]  ;;  %v2815_v13 = vld [vmem:[#allocation6 + $0x180] sm:$0xf0]  ;;  %v2776_v59 = vld [vmem:[#allocation6 + $0x4c] sm:$0xf] }
 0x3b6   :  { %v2470_v61 = vld [vmem:[#allocation6 + $0x50] sm:$0xf]  ;;  %v2467_v0 = vor.u32 %v2776_v59, %v2464_v60 }
 0x431   :  { %v1168_v15 = vpop.f32.mrf.mxu0 }
 0x432   :  { %v1169_v17 = vadd.f32 %v1168_v15, %v1110_v16  ;;  %v2784_v15 = vld [vmem:[#allocation6 + $0x88] sm:$0xf0] }
 0x433   :  { %v2475_v27 = vor.u32 %v2784_v15, %v2474_v14  ;;  %v2775_v15 = vld [vmem:[#allocation6 + $0x44] sm:$0xf] }
 0x434   :  { %v1173_v20 = vmax.f32 %v1169_v17, 0.0  ;;  %v2507_v17 = vor.u32 %v2788_v6, %v2504_v7  ;;  %v2487_v6 = vor.u32 %v2782_v3, %v2484_v4  ;;  %v2814_v7 = vld [vmem:[#allocation6 + $0x178] sm:$0xf0]  ;;  %v2772_v3 = vld [vmem:[#allocation6 + $0x28] sm:$0xf0] }
 0x435   :  { %1718 = vmatpush.bf16.msrb.mxu3 %v2475_v27  ;;  %v2768_v27 = vld [vmem:[#allocation6 + $0xc] sm:$0xf]  ;;  %v2769_v4 = vld [vmem:[#allocation6 + $0x14] sm:$0xf] }
 0x436   :  { %1731 = vmatpush.bf16.msra.mxu0 %v2507_v17  ;;  %v2574_v17 = vld [vmem:[#allocation6 + $0x128] sm:$0xf] }
 0x439   :  { %v1170_v18 = vpop.f32.mrf.mxu0  ;;  %1719 = vmatpush.bf16.msrb.mxu3 %v2447_v37  ;;  %v2801_v37 = vld [vmem:[#allocation6 + $0x110] sm:$0xf0] }
 0x43a   :  { %v1171_v19 = vadd.f32 %v1170_v18, %v1110_v16  ;;  %v2571_v16 = vor.u32 %v2803_v11, %v2568_v12  ;;  %v2511_v18 = vor.u32 %v2792_v10, %v2510_v8  ;;  %v2811_v8 = vld [vmem:[#allocation6 + $0x164] sm:$0xf]  ;;  %v2603_v10 = vor.u32 %v2814_v7, %v2602_v5  ;;  %v2610_v12 = vld [vmem:[#allocation6 + $0x168] sm:$0xf]  ;;  %v2436_v5 = vld [vmem:[#allocation6 + $0x2c] sm:$0xf0] }
 0x43b   :  { %v2607_v11 = vor.u32 %v2811_v8, %v2604_v9  ;;  %v2611_v14 = vor.u32 %v2815_v13, %v2610_v12  ;;  %v2773_v7 = vld [vmem:[#allocation6 + $0x30] sm:$0xf0]  ;;  %v2439_v9 = vor.u32 %v2769_v4, %v2436_v5  ;;  %v1276_v12 = vld [vmem:[#allocation7 + $0x38] ss:$0 sm:$0xff] }
 0x43c   :  { %v1174_v21 = vmax.f32 %v1171_v19, 0.0  ;;  %v2781_v19 = vld [vmem:[#allocation6 + $0x74] sm:$0xf]  ;;  %1757 = vmatpush.bf16.msra.mxu2 %v2571_v16  ;;  %1745 = vmatpush.bf16.msra.mxu1 %v2511_v18  ;;  %v2456_v16 = vld [vmem:[#allocation6 + $0x5c] sm:$0xf0] }
 0x43d   :  { %v2479_v29 = vor.u32 %v2781_v19, %v2476_v23  ;;  %1720 = vmatpush.bf16.msrb.mxu3 %v2419_v49  ;;  %v2459_v18 = vor.u32 %v2775_v15, %v2456_v16  ;;  %v2807_v19 = vld [vmem:[#allocation6 + $0x140] sm:$0xf0]  ;;  %v2786_v49 = vld [vmem:[#allocation6 + $0x98] sm:$0xf0] }
 0x43e   :  { %v1175_v22 = vpack.c.bf16 %v1174_v21, %v1173_v20  ;;  %v2796_v20 = vld [vmem:[#allocation6 + $0xec] sm:$0xf]  ;;  %v2540_v21 = vld [vmem:[#allocation6 + $0x104] sm:$0xf0] }
 0x43f   :  { %v2543_v28 = vor.u32 %v2796_v20, %v2540_v21  ;;  %1732 = vmatpush.bf16.msra.mxu0 %v2479_v29  ;;  %v2804_v20 = vld [vmem:[#allocation6 + $0x12c] sm:$0xf]  ;;  %v2576_v21 = vld [vmem:[#allocation6 + $0x144] sm:$0xf0]  ;;  %v2546_v29 = vld [vmem:[#allocation6 + $0xf0] sm:$0xf] }
 0x440   :  { %1250 = vmatmul.bf16.vlgmr.msrb.gmra.mxu1 %v1175_v22  ;;  %v2579_v23 = vor.u32 %v2804_v20, %v2576_v21  ;;  %v2547_v34 = vor.u32 %v2800_v31, %v2546_v29  ;;  %v1408_v20 = vld [vmem:[#allocation7 + $0x39] ss:$8 sm:$0xf0] }
 0x441   :  { %1758 = vmatpush.bf16.msra.mxu2 %v2543_v28  ;;  %1746 = vmatpush.bf16.msra.mxu1 %v2483_v30  ;;  %v2428_v28 = vld [vmem:[#allocation6 + $0x24] sm:$0xf0] }
 0x442   :  { %1769 = vmatpush.bf16.msra.mxu3 %v2631_v62  ;;  %v2431_v30 = vor.u32 %v2768_v27, %v2428_v28  ;;  %v2780_v62 = vld [vmem:[#allocation6 + $0x68] sm:$0xf0] }
 0x443   :  { %1733 = vmatpush.bf16.msra.mxu0 %v2451_v39  ;;  %v2518_v39 = vld [vmem:[#allocation6 + $0xb8] sm:$0xf]  ;;  %v2471_v1 = vor.u32 %v2780_v62, %v2470_v61 }
 0x445   :  { %1747 = vmatpush.bf16.msra.mxu1 %v2455_v40  ;;  %1759 = vmatpush.bf16.msra.mxu2 %v2515_v58  ;;  %v2793_v40 = vld [vmem:[#allocation6 + $0xd0] sm:$0xf0]  ;;  %v2779_v58 = vld [vmem:[#allocation6 + $0x60] sm:$0xf0] }
 0x446   :  { %1770 = vmatpush.bf16.msra.mxu3 %v2603_v10  ;;  %v2519_v42 = vor.u32 %v2793_v40, %v2518_v39 }
 0x447   :  { %1734 = vmatpush.bf16.msra.mxu0 %v2423_v52  ;;  %v2492_v52 = vld [vmem:[#allocation6 + $0x9c] sm:$0xf0] }
 0x449   :  { %1748 = vmatpush.bf16.msra.mxu1 %v2427_v53  ;;  %1760 = vmatpush.bf16.msra.mxu2 %v2487_v6  ;;  %v2498_v53 = vld [vmem:[#allocation6 + $0x88] sm:$0xf]  ;;  %v2442_v6 = vld [vmem:[#allocation6 + $0x18] sm:$0xf] }
 0x44a   :  { %v2443_v10 = vor.u32 %v2773_v7, %v2442_v6 }
 0x44b   :  { %1783 = vmatpush.bf16.msrb.mxu0 %v2635_v63  ;;  %v2463_v63 = vor.u32 %v2779_v58, %v2462_v57 }
 0x44d   :  { %1797 = vmatpush.bf16.msrb.mxu1 %v2639_v2  ;;  %1761 = vmatpush.bf16.msra.mxu2 %v2459_v18  ;;  %v2434_v2 = vld [vmem:[#allocation6 + $0x10] sm:$0xf] }
 0x44e   :  { %v2435_v8 = vor.u32 %v2772_v3, %v2434_v2 }
 0x44f   :  { %1784 = vmatpush.bf16.msrb.mxu0 %v2607_v11 }
 0x451   :  { %1798 = vmatpush.bf16.msrb.mxu1 %v2611_v14  ;;  %1762 = vmatpush.bf16.msra.mxu2 %v2431_v30 }
 0x453   :  { %1785 = vmatpush.bf16.msrb.mxu0 %v2579_v23 }
 0x457   :  { %1786 = vmatpush.bf16.msrb.mxu0 %v2551_v35 }
 0x4bd   :  { %v1251_v22 = vpop.f32.mrf.mxu1 }
 0x4be   :  { %v1252_v38 = vadd.f32 %v1251_v22, %v1193_v26  ;;  %v2575_v22 = vor.u32 %v2807_v19, %v2574_v17  ;;  %v1407_v19 = vld [vmem:[#allocation7 + $0x39] ss:$8 sm:$0xf] }
 0x4bf   :  { %v3096_v21 = vor.u32 %v1408_v20, %v1407_v19 }
 0x4c0   :  { %v1256_v50 = vmax.f32 %v1252_v38, 0.0  ;;  %1771 = vmatpush.bf16.msra.mxu3 %v2575_v22  ;;  %v2555_v38 = vor.u32 %v2801_v37, %v2554_v36 }
 0x4c1   :  { %v1412_v22 = vperm.slane %v3096_v21, 1  ;;  %v1413_v23 = vperm.slane %v3096_v21, 2  ;;  %v1411_v29 = vperm.slane %v3096_v21, 0  ;;  %v1414_v31 = vperm.slane %v3096_v21, 3 }
 0x4c2   :  { %v1415_v5 = vperm.slane %v3096_v21, 4 }
 0x4c4   :  { %1772 = vmatpush.bf16.msra.mxu3 %v2547_v34 }
 0x4c5   :  { %v1253_v43 = vpop.f32.mrf.mxu1 }
 0x4c6   :  { %v1254_v46 = vadd.f32 %v1253_v43, %v1193_v26  ;;  %v2583_v26 = vor.u32 %v2808_v25, %v2582_v24  ;;  %v2520_v43 = vld [vmem:[#allocation6 + $0xd4] sm:$0xf0] }
 0x4c8   :  { %v1257_v51 = vmax.f32 %v1254_v46, 0.0  ;;  %1799 = vmatpush.bf16.msrb.mxu1 %v2583_v26  ;;  %v2523_v46 = vor.u32 %v2790_v41, %v2520_v43  ;;  %1773 = vmatpush.bf16.msra.mxu3 %v2519_v42 }
 0x4ca   :  { %v1258_v54 = vpack.c.bf16 %v1257_v51, %v1256_v50  ;;  %v2783_v50 = vld [vmem:[#allocation6 + $0x84] sm:$0xf]  ;;  %v2491_v51 = vor.u32 %v2786_v49, %v2490_v48  ;;  %1787 = vmatpush.bf16.msrb.mxu0 %v2523_v46 }
 0x4cb   :  { %v2495_v55 = vor.u32 %v2783_v50, %v2492_v52  ;;  %v1416_v50 = vperm.slane %v3096_v21, 5 }
 0x4cc   :  { %1333 = vmatmul.bf16.vlgmr.msrb.gmra.mxu2 %v1258_v54  ;;  %1800 = vmatpush.bf16.msrb.mxu1 %v2555_v38  ;;  %v2787_v54 = vld [vmem:[#allocation6 + $0xa0] sm:$0xf0] }
 0x4cd   :  { %v2499_v56 = vor.u32 %v2787_v54, %v2498_v53  ;;  %1774 = vmatpush.bf16.msra.mxu3 %v2491_v51  ;;  %v1417_v54 = vperm.slane %v3096_v21, 6 }
 0x4ce   :  { %1788 = vmatpush.bf16.msrb.mxu0 %v2495_v55 }
 0x4d0   :  { %1801 = vmatpush.bf16.msrb.mxu1 %v2527_v47 }
 0x4d1   :  { %1775 = vmatpush.bf16.msra.mxu3 %v2463_v63 }
 0x4d2   :  { %1789 = vmatpush.bf16.msrb.mxu0 %v2467_v0 }
 0x4d4   :  { %1802 = vmatpush.bf16.msrb.mxu1 %v2499_v56 }
 0x4d5   :  { %1776 = vmatpush.bf16.msra.mxu3 %v2435_v8 }
 0x4d6   :  { %1790 = vmatpush.bf16.msrb.mxu0 %v2439_v9 }
 0x4d8   :  { %1803 = vmatpush.bf16.msrb.mxu1 %v2471_v1 }
 0x4dc   :  { %1804 = vmatpush.bf16.msrb.mxu1 %v2443_v10 }
 0x54f   :  { %v1334_v11 = vpop.f32.mrf.mxu2 }
 0x550   :  { %v1335_v13 = vadd.f32 %v1334_v11, %v1276_v12 }
 0x552   :  { %v1339_v16 = vmax.f32 %v1335_v13, 0.0 }
 0x557   :  { %v1336_v14 = vpop.f32.mrf.mxu2 }
 0x558   :  { %v1337_v15 = vadd.f32 %v1336_v14, %v1276_v12 }
 0x55a   :  { %v1340_v17 = vmax.f32 %v1337_v15, 0.0 }
 0x55c   :  { %v1341_v18 = vpack.c.bf16 %v1340_v17, %v1339_v16 }
 0x55e   :  { %1721 = vmatmul.bf16.vlgmr.msrb.gmra.mxu3 %v1341_v18  ;;  %1735 = vmatmul.bf16.vlgmr.msra.gmra.mxu0 %v1341_v18 }
 0x55f   :  { %1749 = vmatmul.bf16.vlgmr.msra.gmra.mxu1 %v1341_v18  ;;  %1763 = vmatmul.bf16.vlgmr.msra.gmra.mxu2 %v1341_v18 }
 0x56e   :  { %1777 = vmatmul.bf16.vlgmr.msra.gmra.mxu3 %v1341_v18  ;;  %1791 = vmatmul.bf16.vlgmr.msrb.gmra.mxu0 %v1341_v18 }
 0x56f   :  { %1805 = vmatmul.bf16.vlgmr.msrb.gmra.mxu1 %v1341_v18 }
 0x5db   :  { %v1736_v24 = vpop.f32.mrf.mxu0 }
 0x5dc   :  { %v1737_v25 = vadd.f32 %v1736_v24, %v1412_v22  ;;  %v1750_v26 = vpop.f32.mrf.mxu1 }
 0x5dd   :  { %v1751_v27 = vadd.f32 %v1750_v26, %v1413_v23 }
 0x5de   :  { %v1812_v28 = vsub.f32 0.0, %v1737_v25 }
 0x5df   :  { %v1813_v30 = vsub.f32 0.0, %v1751_v27 }
 0x5e0   :  { %v1827_v32 = vmul.f32 1.442695, %v1812_v28 }
 0x5e1   :  { %v1829_v33 = vmul.f32 1.442695, %v1813_v30  ;;  %v1722_v34 = vpop.f32.mrf.mxu3 }
 0x5e2   :  { %2833 = vpow2.f32 %v1827_v32  ;;  %v1723_v35 = vadd.f32 %v1722_v34, %v1411_v29  ;;  %v1764_v36 = vpop.f32.mrf.mxu2 }
 0x5e3   :  { %2835 = vpow2.f32 %v1829_v33  ;;  %v1765_v37 = vadd.f32 %v1764_v36, %v1414_v31  ;;  %v1738_v38 = vpop.f32.mrf.mxu0 }
 0x5e4   :  { %v1811_v39 = vsub.f32 0.0, %v1723_v35  ;;  %v1739_v40 = vadd.f32 %v1738_v38, %v1412_v22  ;;  %v1752_v41 = vpop.f32.mrf.mxu1 }
 0x5e5   :  { %v1814_v42 = vsub.f32 0.0, %v1765_v37  ;;  %v1753_v43 = vadd.f32 %v1752_v41, %v1413_v23 }
 0x5e6   :  { %v1825_v44 = vmul.f32 1.442695, %v1811_v39  ;;  %v1819_v45 = vsub.f32 0.0, %v1739_v40 }
 0x5e7   :  { %v1831_v46 = vmul.f32 1.442695, %v1814_v42  ;;  %v1820_v47 = vsub.f32 0.0, %v1753_v43 }
 0x5e8   :  { %v2834_v48 = vpop.eup %2833  ;;  %2837 = vpow2.f32 %v1825_v44  ;;  %v1841_v49 = vmul.f32 1.442695, %v1819_v45 }
 0x5e9   :  { %v2836_v51 = vpop.eup %2835  ;;  %2839 = vpow2.f32 %v1831_v46  ;;  %v1843_v52 = vmul.f32 1.442695, %v1820_v47  ;;  %v1724_v53 = vpop.f32.mrf.mxu3  ;;  %v1854_v55 = vadd.f32 1.0, %v2834_v48 }
 0x5ea   :  { %2841 = vpow2.f32 %v1841_v49  ;;  %v1725_v56 = vadd.f32 %v1724_v53, %v1411_v29  ;;  %v1766_v57 = vpop.f32.mrf.mxu2  ;;  %v1855_v58 = vadd.f32 1.0, %v2836_v51 }
 0x5eb   :  { %v1767_v59 = vadd.f32 %v1766_v57, %v1414_v31  ;;  %v1792_v60 = vpop.f32.mrf.mxu0  ;;  %2843 = vpow2.f32 %v1843_v52 }
 0x5ec   :  { %v1818_v61 = vsub.f32 0.0, %v1725_v56  ;;  %v1793_v62 = vadd.f32 %v1792_v60, %v1416_v50  ;;  %v1806_v63 = vpop.f32.mrf.mxu1  ;;  %2845 = vrcp.f32 %v1854_v55 }
 0x5ed   :  { %v1821_v0 = vsub.f32 0.0, %v1767_v59  ;;  %v1807_v1 = vadd.f32 %v1806_v63, %v1417_v54  ;;  %2847 = vrcp.f32 %v1855_v58 }
 0x5ee   :  { %v2838_v2 = vpop.eup %2837  ;;  %v1839_v3 = vmul.f32 1.442695, %v1818_v61  ;;  %v1816_v4 = vsub.f32 0.0, %v1793_v62 }
 0x5ef   :  { %v2840_v6 = vpop.eup %2839  ;;  %v1853_v7 = vadd.f32 1.0, %v2838_v2  ;;  %v1817_v8 = vsub.f32 0.0, %v1807_v1  ;;  %v1845_v11 = vmul.f32 1.442695, %v1821_v0 }
 0x5f0   :  { %v2842_v9 = vpop.eup %2841  ;;  %v1856_v10 = vadd.f32 1.0, %v2840_v6  ;;  %2849 = vpow2.f32 %v1839_v3  ;;  %v1835_v12 = vmul.f32 1.442695, %v1816_v4 }
 0x5f1   :  { %2851 = vrcp.f32 %v1853_v7  ;;  %v1778_v13 = vpop.f32.mrf.mxu3  ;;  %v1861_v14 = vadd.f32 1.0, %v2842_v9  ;;  %v2844_v16 = vpop.eup %2843  ;;  %v1837_v17 = vmul.f32 1.442695, %v1817_v8 }
 0x5f2   :  { %2853 = vrcp.f32 %v1856_v10  ;;  %v1779_v15 = vadd.f32 %v1778_v13, %v1415_v5  ;;  %v2846_v19 = vpop.eup %2845  ;;  %v1862_v26 = vadd.f32 1.0, %v2844_v16 }
 0x5f3   :  { %v1794_v18 = vpop.f32.mrf.mxu0  ;;  %2855 = vpow2.f32 %v1845_v11  ;;  %v2848_v23 = vpop.eup %2847 }
 0x5f4   :  { %v1815_v20 = vsub.f32 0.0, %v1779_v15  ;;  %v1795_v21 = vadd.f32 %v1794_v18, %v1416_v50  ;;  %v1808_v22 = vpop.f32.mrf.mxu1  ;;  %2857 = vpow2.f32 %v1835_v12 }
 0x5f5   :  { %v1809_v24 = vadd.f32 %v1808_v22, %v1417_v54  ;;  %2859 = vrcp.f32 %v1861_v14 }
 0x5f6   :  { %v2850_v25 = vpop.eup %2849  ;;  %v1833_v27 = vmul.f32 1.442695, %v1815_v20  ;;  %v1823_v28 = vsub.f32 0.0, %v1795_v21  ;;  %2861 = vpow2.f32 %v1837_v17 }
 0x5f7   :  { %v2852_v29 = vpop.eup %2851  ;;  %v1860_v30 = vadd.f32 1.0, %v2850_v25  ;;  %v1824_v31 = vsub.f32 0.0, %v1809_v24 }
 0x5f8   :  { %v2854_v32 = vpop.eup %2853  ;;  %v1881_v33 = vpack.c.bf16 %v2846_v19, %v2852_v29  ;;  %2863 = vpow2.f32 %v1833_v27  ;;  %v1849_v34 = vmul.f32 1.442695, %v1823_v28 }
 0x5f9   :  { %v1882_v35 = vpack.c.bf16 %v2854_v32, %v2848_v23  ;;  %2865 = vrcp.f32 %v1860_v30  ;;  %v1851_v36 = vmul.f32 1.442695, %v1824_v31  ;;  %v1780_v37 = vpop.f32.mrf.mxu3  ;;  %v2856_v38 = vpop.eup %2855 }
 0x5fa   :  { %1889 = vst [vmem:[%s3135_s6] sm:$0xff] %v1881_v33  ;;  %2867 = vrcp.f32 %v1862_v26  ;;  %v1781_v39 = vadd.f32 %v1780_v37, %v1415_v5  ;;  %v2858_v40 = vpop.eup %2857  ;;  %v1863_v41 = vadd.f32 1.0, %v2856_v38 }
 0x5fb   :  { %1890 = vst [vmem:[%s3135_s6 + $0x8] sm:$0xff] %v1882_v35  ;;  %2869 = vpow2.f32 %v1851_v36  ;;  %v2860_v42 = vpop.eup %2859  ;;  %v1858_v43 = vadd.f32 1.0, %v2858_v40 }
 0x5fc   :  { %2871 = vpow2.f32 %v1849_v34  ;;  %v1822_v44 = vsub.f32 0.0, %v1781_v39  ;;  %v2862_v45 = vpop.eup %2861 }
 0x5fd   :  { %2873 = vrcp.f32 %v1863_v41  ;;  %v1859_v47 = vadd.f32 1.0, %v2862_v45 }
 0x5fe   :  { %v2864_v46 = vpop.eup %2863  ;;  %v1847_v48 = vmul.f32 1.442695, %v1822_v44  ;;  %2875 = vrcp.f32 %v1858_v43 }
 0x5ff   :  { %v2866_v49 = vpop.eup %2865  ;;  %v1857_v50 = vadd.f32 1.0, %v2864_v46  ;;  %2877 = vrcp.f32 %v1859_v47 }
 0x600   :  { %v2868_v51 = vpop.eup %2867  ;;  %v1885_v52 = vpack.c.bf16 %v2860_v42, %v2866_v49 }
 0x601   :  { %v2870_v53 = vpop.eup %2869  ;;  %2879 = vrcp.f32 %v1857_v50 }
 0x602   :  { %v2872_v54 = vpop.eup %2871  ;;  %1893 = vst [vmem:[%s3135_s6 + $0x1c] sm:$0xff] %v1885_v52  ;;  %v1866_v55 = vadd.f32 1.0, %v2870_v53  ;;  %2881 = vpow2.f32 %v1847_v48 }
 0x603   :  { %v2874_v56 = vpop.eup %2873  ;;  %v1865_v60 = vadd.f32 1.0, %v2872_v54 }
 0x604   :  { %v1886_v57 = vpack.c.bf16 %v2874_v56, %v2868_v51  ;;  %2883 = vrcp.f32 %v1866_v55  ;;  %v2876_v58 = vpop.eup %2875 }
 0x605   :  { %v2878_v59 = vpop.eup %2877  ;;  %2885 = vrcp.f32 %v1865_v60 }
 0x606   :  { %1894 = vst [vmem:[%s3135_s6 + $0x24] sm:$0xff] %v1886_v57  ;;  %v1884_v62 = vpack.c.bf16 %v2878_v59, %v2878_v59 }
 0x607   :  { %v2880_v61 = vpop.eup %2879 }
 0x608   :  { %v2882_v63 = vpop.eup %2881  ;;  %v1883_v0 = vpack.c.bf16 %v2876_v58, %v2880_v61  ;;  %1892 = vst [vmem:[%s3135_s6 + $0x18] sm:$0xf] %v1884_v62 }
 0x609   :  { %v1864_v1 = vadd.f32 1.0, %v2882_v63 }
 0x60a   :  { %v2884_v2 = vpop.eup %2883  ;;  %1891 = vst [vmem:[%s3135_s6 + $0x10] sm:$0xff] %v1883_v0 }
 0x60b   :  { %v1888_v3 = vpack.c.bf16 %v2884_v2, %v2884_v2  ;;  %2887 = vrcp.f32 %v1864_v1  ;;  %v2886_v4 = vpop.eup %2885 }
 0x60d   :  { %1896 = vst [vmem:[%s3135_s6 + $0x34] sm:$0xf] %v1888_v3 }
 0x611   :  { %v2888_v5 = vpop.eup %2887 }
 0x612   :  { %v1887_v6 = vpack.c.bf16 %v2886_v4, %v2888_v5 }
 0x614   :  { %1895 = vst [vmem:[%s3135_s6 + $0x2c] sm:$0xff] %v1887_v6 }
 0x615   :  { %1905 = vsyncpa [#allocation3], 1 }
 0x616   :  { %1906 = vsyncpa [#allocation5], 1 }
 0x617   :  { %1907 = vsyncpa [#allocation8], 1 }

</bundles_post_ra>
